<compile_context>
chip_gen: v6e
topology: v6e:2x2x1
jax: 0.10.0
libtpu: 0.0.40
codegen_flags: <defaults>
</compile_context>

<pallas_src>
import math
import numpy as np
import jax
import jax.numpy as jnp
from jax.experimental import pallas as pl
from jax.experimental.pallas import tpu as pltpu

# ----------------------------- small config ---------------------------------
B, S, H = 2, 8, 32          # batch, seq, hidden
NH, HD = 4, H // 4          # heads, head dim (synthetic encoder)
FF = 64                     # FFN width
L = 2                       # encoder layers
VOCAB = 100
C = 3                       # num_labels
LN_EPS = 1e-5
BS = B * S


# --------------------------- fused ProBERT kernel ----------------------------
def probert_kernel(pron_ref,                     # SMEM scalar prefetch [B] int32
                   x_ref, mask_ref,
                   wqkv_ref, bqkv_ref, wo_ref, bo_ref,
                   w1_ref, b1_ref, w2_ref, b2_ref,
                   ln1g_ref, ln1b_ref, ln2g_ref, ln2b_ref,
                   wcls_ref,
                   probs_ref):
    # Residual stream kept flattened [B*S, H] = [16, 32] (2 f32 sublane groups).
    x2 = x_ref[...].reshape(BS, H)
    mask = mask_ref[...]                          # [B, 1, S]  (1.0 keep, 0.0 pad)
    # hoist the broadcast out of the layer/head loops (no CSE of broadcast_in_dim)
    attn_bias = jnp.broadcast_to((1.0 - mask) * -1e9, (B, S, S))

    def layer_norm(v, g, b):
        mu = jnp.mean(v, axis=-1, keepdims=True)
        var = jnp.mean((v - mu) ** 2, axis=-1, keepdims=True)
        return (v - mu) * jax.lax.rsqrt(var + LN_EPS) * g + b

    scale = 1.0 / math.sqrt(HD)
    for l in range(L):                            # static unroll over layers (tiny)
        # fused QKV: one MXU push instead of three
        qkv = jnp.dot(x2, wqkv_ref[l],
                      preferred_element_type=jnp.float32) + bqkv_ref[l]   # [BS, 3H]
        wo_l = wo_ref[l]                                                   # [H, H]

        # attention: batched over B, static loop over heads only; the attention
        # output bias seeds the accumulator (saves a separate elementwise add).
        attn = jnp.broadcast_to(bo_ref[l], (BS, H))
        for n in range(NH):
            qs = qkv[:, n * HD:(n + 1) * HD].reshape(B, S, HD)
            ks = qkv[:, H + n * HD:H + (n + 1) * HD].reshape(B, S, HD)
            vs = qkv[:, 2 * H + n * HD:2 * H + (n + 1) * HD].reshape(B, S, HD)
            s = jnp.einsum('bqd,bkd->bqk', qs, ks,
                           preferred_element_type=jnp.float32) * scale + attn_bias
            m = jnp.max(s, axis=-1, keepdims=True)
            e = jnp.exp(s - m)
            p = e * pl.reciprocal(jnp.sum(e, axis=-1, keepdims=True), approx=True)
            ctx = jnp.einsum('bqk,bkd->bqd', p, vs,
                             preferred_element_type=jnp.float32).reshape(BS, HD)
            # per-head output projection: avoids the lane-dim concatenate
            attn = attn + jnp.dot(ctx, wo_l[n * HD:(n + 1) * HD, :],
                                  preferred_element_type=jnp.float32)

        x2 = layer_norm(x2 + attn, ln1g_ref[l], ln1b_ref[l])

        hdn = jnp.dot(x2, w1_ref[l], preferred_element_type=jnp.float32) + b1_ref[l]
        hdn = jax.nn.gelu(hdn)
        ffn = jnp.dot(hdn, w2_ref[l], preferred_element_type=jnp.float32) + b2_ref[l]
        x2 = layer_norm(x2 + ffn, ln2g_ref[l], ln2b_ref[l])

    # ------------------ ProBERT head (fused, no HBM round trip) --------------
    # Reference bug reproduced: only pronoun_ind[0] is effectively used.
    p_idx = jnp.clip(pron_ref[0], 0, S - 1)       # clamp: no unchecked OOB read
    x3 = x2.reshape(B, S, H)
    sel = (jax.lax.broadcasted_iota(jnp.int32, (B, S, 1), 1)
           == p_idx).astype(jnp.float32)
    pron_repr = jnp.sum(x3 * sel, axis=1)         # [B, H] one-hot gather

    # dropout(0.1) is identity at inference; classifier is bias-free
    logits = jnp.dot(pron_repr, wcls_ref[...],
                     preferred_element_type=jnp.float32)                  # [B, C]
    m = jnp.max(logits, axis=-1, keepdims=True)
    e = jnp.exp(logits - m)
    probs_ref[...] = e * pl.reciprocal(jnp.sum(e, axis=-1, keepdims=True),
                                       approx=True)


def probert_forward(pronoun_ind, x_emb, mask3, enc_params, wcls):
    (wqkv, bqkv, wo, bo, w1, b1, w2, b2,
     ln1g, ln1b, ln2g, ln2b) = enc_params
    tensors = [x_emb, mask3, wqkv, bqkv, wo, bo, w1, b1, w2, b2,
               ln1g, ln1b, ln2g, ln2b, wcls]

    def full_spec(shape):
        n = len(shape)
        return pl.BlockSpec(shape, lambda i, pr, _n=n: (0,) * _n)

    grid_spec = pltpu.PrefetchScalarGridSpec(
        num_scalar_prefetch=1,                    # pronoun_ind -> SMEM
        grid=(1,),                                # single program: whole model fits
        in_specs=[full_spec(t.shape) for t in tensors],
        out_specs=pl.BlockSpec((B, C), lambda i, pr: (0, 0)),
    )
    probs = pl.pallas_call(
        probert_kernel,
        grid_spec=grid_spec,
        out_shape=jax.ShapeDtypeStruct((B, C), jnp.float32),
        compiler_params=pltpu.CompilerParams(
            dimension_semantics=("arbitrary",)),
    )(pronoun_ind, *tensors)
    return probs


def head_outputs(probs, labels):
    """argmax + cross-entropy on the already-softmaxed 'logits' (reference
    double-softmax bug reproduced), ignore_index=-100.  Tiny wrapper-side JAX
    (no sub-vreg VMEM outputs from the kernel)."""
    preds = jnp.argmax(probs, axis=-1)
    logp = jax.nn.log_softmax(probs, axis=-1)
    valid = (labels != -100)
    safe = jnp.where(valid, labels, 0)
    picked = jnp.take_along_axis(logp, safe[:, None], axis=-1)[:, 0]
    validf = valid.astype(jnp.float32)
    den = jnp.maximum(jnp.sum(validf), 1.0)       # guard: all labels ignored
    loss = -jnp.sum(picked * validf) / den
    return preds, loss


# ----------------------------- parameter init --------------------------------
def init_params(key):
    ks = list(jax.random.split(key, 8))
    n = lambda k, shp, s=0.05: jax.random.normal(k, shp, jnp.float32) * s
    word_emb = n(ks[0], (VOCAB, H))
    pos_emb = n(ks[1], (S, H))
    wqkv = n(ks[2], (L, H, 3 * H)); bqkv = jnp.zeros((L, 1, 3 * H), jnp.float32)
    wo = n(ks[3], (L, H, H));       bo = jnp.zeros((L, 1, H), jnp.float32)
    w1 = n(ks[4], (L, H, FF));      b1 = jnp.zeros((L, 1, FF), jnp.float32)
    w2 = n(ks[5], (L, FF, H));      b2 = jnp.zeros((L, 1, H), jnp.float32)
    ln1g = jnp.ones((L, 1, H), jnp.float32); ln1b = jnp.zeros((L, 1, H), jnp.float32)
    ln2g = jnp.ones((L, 1, H), jnp.float32); ln2b = jnp.zeros((L, 1, H), jnp.float32)
    wcls = n(ks[6], (H, C))   # classifier: Linear(hidden, num_labels, bias=False)
    enc = (wqkv, bqkv, wo, bo, w1, b1, w2, b2, ln1g, ln1b, ln2g, ln2b)
    return word_emb, pos_emb, enc, wcls


# -------------------------- pure-JAX reference (check) -----------------------
def ref_forward(x_emb, mask, enc, wcls, pronoun_ind, labels):
    (wqkv, bqkv, wo, bo, w1, b1, w2, b2, ln1g, ln1b, ln2g, ln2b) = enc

    def ln(v, g, b):
        mu = jnp.mean(v, -1, keepdims=True)
        var = jnp.mean((v - mu) ** 2, -1, keepdims=True)
        return (v - mu) * jax.lax.rsqrt(var + LN_EPS) * g + b

    x = x_emb
    bias = (1.0 - mask)[:, None, :] * -1e9
    for l in range(L):
        qkv = x @ wqkv[l] + bqkv[l]
        q, k, v = qkv[..., :H], qkv[..., H:2 * H], qkv[..., 2 * H:]
        parts = []
        for h in range(NH):
            sl = slice(h * HD, (h + 1) * HD)
            s = jnp.einsum('bsd,btd->bst', q[..., sl], k[..., sl]) / math.sqrt(HD) + bias
            p = jax.nn.softmax(s, axis=-1)
            parts.append(jnp.einsum('bst,btd->bsd', p, v[..., sl]))
        ctx = jnp.concatenate(parts, axis=-1)
        x = ln(x + (ctx @ wo[l] + bo[l]), ln1g[l], ln1b[l])
        f = jax.nn.gelu(x @ w1[l] + b1[l]) @ w2[l] + b2[l]
        x = ln(x + f, ln2g[l], ln2b[l])

    pron = x[:, int(pronoun_ind[0]), :]
    probs = jax.nn.softmax(pron @ wcls, axis=-1)
    preds = jnp.argmax(probs, axis=-1)
    logp = jax.nn.log_softmax(probs, axis=-1)     # double softmax, like reference
    valid = (labels != -100).astype(jnp.float32)
    safe_lab = jnp.where(labels != -100, labels, 0)
    picked = jnp.take_along_axis(logp, safe_lab[:, None], axis=-1)[:, 0]
    loss = -jnp.sum(picked * valid) / jnp.maximum(jnp.sum(valid), 1.0)
    return probs, preds, loss


# ------------------------------------ main ------------------------------------
if __name__ == "__main__":
    key = jax.random.PRNGKey(0)
    k_par, k_ids = jax.random.split(key)
    word_emb, pos_emb, enc_params, wcls = init_params(k_par)

    input_ids = jax.random.randint(k_ids, (B, S), 0, VOCAB, dtype=jnp.int32)
    attention_mask = jnp.array([[1.0] * S, [1.0] * (S - 2) + [0.0] * 2], jnp.float32)
    pronoun_ind = jnp.array([3, 5], dtype=jnp.int32)   # only [0] matters (ref bug)
    labels = jnp.array([2, -100], dtype=jnp.int32)     # exercises ignore_index=-100
    # TODO(synk): token_type_ids is None for the RoBERTa config; omitted.

    # glue (plain JAX): embedding lookup
    x_emb = word_emb[input_ids] + pos_emb[None, :, :]          # [B, S, H]
    mask3 = attention_mask.reshape(B, 1, S)

    probs = probert_forward(pronoun_ind, x_emb, mask3, enc_params, wcls)
    preds, loss = head_outputs(probs, labels)
    jax.block_until_ready((probs, preds, loss))

    # sanity check against a pure-JAX reference (lenient fp tolerance: MXU/EUP)
    rprobs, rpreds, rloss = ref_forward(x_emb, attention_mask, enc_params,
                                        wcls, np.asarray(pronoun_ind), labels)
    assert probs.shape == (B, C) and preds.shape == (B,) and loss.shape == ()
    assert np.all(np.isfinite(np.asarray(probs))) and np.isfinite(float(loss))
    assert np.allclose(np.asarray(probs), np.asarray(rprobs), atol=1e-2, rtol=1e-2)
    assert np.allclose(float(loss), float(rloss), atol=1e-2, rtol=1e-2)
    # argmax check with a tie guard (MXU-vs-VPU rounding can flip exact ties)
    srt = np.sort(np.asarray(rprobs), axis=-1)
    margin = srt[:, -1] - srt[:, -2]
    assert np.all((np.asarray(preds) == np.asarray(rpreds)) | (margin < 1e-3))

    print("KERNEL_OK")
</pallas_src>

<mosaic_0001>
module attributes {stable_mosaic.version = 11 : i64} {
  func.func @probert_kernel(%arg0: i32, %arg1: memref<2xi32, #tpu.memory_space<smem>>, %arg2: memref<2x8x32xf32, #tpu.memory_space<vmem>>, %arg3: memref<2x1x8xf32, #tpu.memory_space<vmem>>, %arg4: memref<2x32x96xf32, #tpu.memory_space<vmem>>, %arg5: memref<2x1x96xf32, #tpu.memory_space<vmem>>, %arg6: memref<2x32x32xf32, #tpu.memory_space<vmem>>, %arg7: memref<2x1x32xf32, #tpu.memory_space<vmem>>, %arg8: memref<2x32x64xf32, #tpu.memory_space<vmem>>, %arg9: memref<2x1x64xf32, #tpu.memory_space<vmem>>, %arg10: memref<2x64x32xf32, #tpu.memory_space<vmem>>, %arg11: memref<2x1x32xf32, #tpu.memory_space<vmem>>, %arg12: memref<2x1x32xf32, #tpu.memory_space<vmem>>, %arg13: memref<2x1x32xf32, #tpu.memory_space<vmem>>, %arg14: memref<2x1x32xf32, #tpu.memory_space<vmem>>, %arg15: memref<2x1x32xf32, #tpu.memory_space<vmem>>, %arg16: memref<32x3xf32, #tpu.memory_space<vmem>>, %arg17: memref<2x3xf32, #tpu.memory_space<vmem>>) attributes {dimension_semantics = [#tpu.dimension_semantics<arbitrary>], iteration_bounds = array<i64: 1>, scalar_prefetch = 1 : i64, scratch_operands = 0 : i64, tpu.core_type = #tpu.core_type<tc>, window_params = [{pipeline_mode = #tpu.pipeline_mode<synchronous>, transform_indices = @transform_0, window_bounds = array<i64: 2, 8, 32>}, {pipeline_mode = #tpu.pipeline_mode<synchronous>, transform_indices = @transform_1, window_bounds = array<i64: 2, 1, 8>}, {pipeline_mode = #tpu.pipeline_mode<synchronous>, transform_indices = @transform_2, window_bounds = array<i64: 2, 32, 96>}, {pipeline_mode = #tpu.pipeline_mode<synchronous>, transform_indices = @transform_3, window_bounds = array<i64: 2, 1, 96>}, {pipeline_mode = #tpu.pipeline_mode<synchronous>, transform_indices = @transform_4, window_bounds = array<i64: 2, 32, 32>}, {pipeline_mode = #tpu.pipeline_mode<synchronous>, transform_indices = @transform_5, window_bounds = array<i64: 2, 1, 32>}, {pipeline_mode = #tpu.pipeline_mode<synchronous>, transform_indices = @transform_6, window_bounds = array<i64: 2, 32, 64>}, {pipeline_mode = #tpu.pipeline_mode<synchronous>, transform_indices = @transform_7, window_bounds = array<i64: 2, 1, 64>}, {pipeline_mode = #tpu.pipeline_mode<synchronous>, transform_indices = @transform_8, window_bounds = array<i64: 2, 64, 32>}, {pipeline_mode = #tpu.pipeline_mode<synchronous>, transform_indices = @transform_9, window_bounds = array<i64: 2, 1, 32>}, {pipeline_mode = #tpu.pipeline_mode<synchronous>, transform_indices = @transform_10, window_bounds = array<i64: 2, 1, 32>}, {pipeline_mode = #tpu.pipeline_mode<synchronous>, transform_indices = @transform_11, window_bounds = array<i64: 2, 1, 32>}, {pipeline_mode = #tpu.pipeline_mode<synchronous>, transform_indices = @transform_12, window_bounds = array<i64: 2, 1, 32>}, {pipeline_mode = #tpu.pipeline_mode<synchronous>, transform_indices = @transform_13, window_bounds = array<i64: 2, 1, 32>}, {pipeline_mode = #tpu.pipeline_mode<synchronous>, transform_indices = @transform_14, window_bounds = array<i64: 32, 3>}, {pipeline_mode = #tpu.pipeline_mode<synchronous>, transform_indices = @transform_15, window_bounds = array<i64: 2, 3>}]} {
    %c0 = arith.constant 0 : index
    %c0_0 = arith.constant 0 : index
    %c0_1 = arith.constant 0 : index
    %0 = vector.load %arg2[%c0, %c0_0, %c0_1] : memref<2x8x32xf32, #tpu.memory_space<vmem>>, vector<2x8x32xf32>
    %1 = vector.shape_cast %0 : vector<2x8x32xf32> to vector<16x32xf32>
    %c0_2 = arith.constant 0 : index
    %c0_3 = arith.constant 0 : index
    %c0_4 = arith.constant 0 : index
    %2 = vector.load %arg3[%c0_2, %c0_3, %c0_4] : memref<2x1x8xf32, #tpu.memory_space<vmem>>, vector<2x1x8xf32>
    %cst = arith.constant 1.000000e+00 : f32
    %3 = vector.broadcast %cst : f32 to vector<2x1x8xf32>
    %4 = arith.subf %3, %2 : vector<2x1x8xf32>
    %cst_5 = arith.constant -1.000000e+09 : f32
    %5 = vector.broadcast %cst_5 : f32 to vector<2x1x8xf32>
    %6 = arith.mulf %4, %5 : vector<2x1x8xf32>
    %7 = vector.shape_cast %6 : vector<2x1x8xf32> to vector<2x1x8xf32>
    %8 = vector.broadcast %7 : vector<2x1x8xf32> to vector<2x8x8xf32>
    %c0_6 = arith.constant 0 : index
    %c0_7 = arith.constant 0 : index
    %c0_8 = arith.constant 0 : index
    %9 = vector.load %arg4[%c0_6, %c0_7, %c0_8] : memref<2x32x96xf32, #tpu.memory_space<vmem>>, vector<1x32x96xf32>
    %10 = vector.shape_cast %9 : vector<1x32x96xf32> to vector<32x96xf32>
    %cst_9 = arith.constant dense<0.000000e+00> : vector<16x96xf32>
    %11 = tpu.matmul %1, %10, %cst_9 {dimension_numbers = #tpu.dot_dimension_numbers<[1], [0], [0], [1], [0, 0, 1, 1], [], []>} : vector<16x32xf32>, vector<32x96xf32>, vector<16x96xf32> -> vector<16x96xf32>
    %c0_10 = arith.constant 0 : index
    %c0_11 = arith.constant 0 : index
    %c0_12 = arith.constant 0 : index
    %12 = vector.load %arg5[%c0_10, %c0_11, %c0_12] : memref<2x1x96xf32, #tpu.memory_space<vmem>>, vector<1x1x96xf32>
    %13 = vector.shape_cast %12 : vector<1x1x96xf32> to vector<1x96xf32>
    %14 = vector.broadcast %13 : vector<1x96xf32> to vector<16x96xf32>
    %15 = arith.addf %11, %14 : vector<16x96xf32>
    %c0_13 = arith.constant 0 : index
    %c0_14 = arith.constant 0 : index
    %c0_15 = arith.constant 0 : index
    %16 = vector.load %arg6[%c0_13, %c0_14, %c0_15] : memref<2x32x32xf32, #tpu.memory_space<vmem>>, vector<1x32x32xf32>
    %17 = vector.shape_cast %16 : vector<1x32x32xf32> to vector<32x32xf32>
    %c0_16 = arith.constant 0 : index
    %c0_17 = arith.constant 0 : index
    %c0_18 = arith.constant 0 : index
    %18 = vector.load %arg7[%c0_16, %c0_17, %c0_18] : memref<2x1x32xf32, #tpu.memory_space<vmem>>, vector<1x1x32xf32>
    %19 = vector.shape_cast %18 : vector<1x1x32xf32> to vector<1x32xf32>
    %20 = vector.shape_cast %19 : vector<1x32xf32> to vector<1x32xf32>
    %21 = vector.broadcast %20 : vector<1x32xf32> to vector<16x32xf32>
    %22 = vector.extract_strided_slice %15 {offsets = [0, 0], sizes = [16, 8], strides = [1, 1]} : vector<16x96xf32> to vector<16x8xf32>
    %23 = vector.shape_cast %22 : vector<16x8xf32> to vector<2x8x8xf32>
    %24 = vector.extract_strided_slice %15 {offsets = [0, 32], sizes = [16, 8], strides = [1, 1]} : vector<16x96xf32> to vector<16x8xf32>
    %25 = vector.shape_cast %24 : vector<16x8xf32> to vector<2x8x8xf32>
    %26 = vector.extract_strided_slice %15 {offsets = [0, 64], sizes = [16, 8], strides = [1, 1]} : vector<16x96xf32> to vector<16x8xf32>
    %27 = vector.shape_cast %26 : vector<16x8xf32> to vector<2x8x8xf32>
    "tpu.trace_start"() <{level = 10 : i32, message = "bqd,bkd->bqk"}> : () -> ()
    %cst_19 = arith.constant dense<0.000000e+00> : vector<2x8x8xf32>
    %28 = tpu.matmul %23, %25, %cst_19 {dimension_numbers = #tpu.dot_dimension_numbers<[2], [2], [1], [1], [0, 0, 0, 1, 1, 1], [0], [0]>} : vector<2x8x8xf32>, vector<2x8x8xf32>, vector<2x8x8xf32> -> vector<2x8x8xf32>
    "tpu.trace_stop"() : () -> ()
    %cst_20 = arith.constant 0.353553385 : f32
    %29 = vector.broadcast %cst_20 : f32 to vector<2x8x8xf32>
    %30 = arith.mulf %28, %29 : vector<2x8x8xf32>
    %31 = arith.addf %30, %8 : vector<2x8x8xf32>
    %cst_21 = arith.constant dense<0xFF800000> : vector<2x8xf32>
    %32 = vector.multi_reduction <maximumf>, %31, %cst_21 [2] : vector<2x8x8xf32> to vector<2x8xf32>
    %33 = vector.shape_cast %32 : vector<2x8xf32> to vector<2x8x1xf32>
    %34 = vector.broadcast %33 : vector<2x8x1xf32> to vector<2x8x8xf32>
    %35 = arith.subf %31, %34 : vector<2x8x8xf32>
    %36 = math.exp %35 : vector<2x8x8xf32>
    %cst_22 = arith.constant dense<0.000000e+00> : vector<2x8xf32>
    %37 = vector.multi_reduction <add>, %36, %cst_22 [2] : vector<2x8x8xf32> to vector<2x8xf32>
    %38 = vector.shape_cast %37 : vector<2x8xf32> to vector<2x8x1xf32>
    %39 = tpu.reciprocal %38 {approx = true} : vector<2x8x1xf32> -> vector<2x8x1xf32>
    %40 = vector.broadcast %39 : vector<2x8x1xf32> to vector<2x8x8xf32>
    %41 = arith.mulf %36, %40 : vector<2x8x8xf32>
    "tpu.trace_start"() <{level = 10 : i32, message = "bqk,bkd->bqd"}> : () -> ()
    %cst_23 = arith.constant dense<0.000000e+00> : vector<2x8x8xf32>
    %42 = tpu.matmul %41, %27, %cst_23 {dimension_numbers = #tpu.dot_dimension_numbers<[2], [1], [1], [2], [0, 0, 0, 1, 1, 2], [0], [0]>} : vector<2x8x8xf32>, vector<2x8x8xf32>, vector<2x8x8xf32> -> vector<2x8x8xf32>
    "tpu.trace_stop"() : () -> ()
    %43 = vector.shape_cast %42 : vector<2x8x8xf32> to vector<16x8xf32>
    %44 = vector.extract_strided_slice %17 {offsets = [0, 0], sizes = [8, 32], strides = [1, 1]} : vector<32x32xf32> to vector<8x32xf32>
    %cst_24 = arith.constant dense<0.000000e+00> : vector<16x32xf32>
    %45 = tpu.matmul %43, %44, %cst_24 {dimension_numbers = #tpu.dot_dimension_numbers<[1], [0], [0], [1], [0, 0, 1, 1], [], []>} : vector<16x8xf32>, vector<8x32xf32>, vector<16x32xf32> -> vector<16x32xf32>
    %46 = arith.addf %21, %45 : vector<16x32xf32>
    %47 = vector.extract_strided_slice %15 {offsets = [0, 8], sizes = [16, 8], strides = [1, 1]} : vector<16x96xf32> to vector<16x8xf32>
    %48 = vector.shape_cast %47 : vector<16x8xf32> to vector<2x8x8xf32>
    %49 = vector.extract_strided_slice %15 {offsets = [0, 40], sizes = [16, 8], strides = [1, 1]} : vector<16x96xf32> to vector<16x8xf32>
    %50 = vector.shape_cast %49 : vector<16x8xf32> to vector<2x8x8xf32>
    %51 = vector.extract_strided_slice %15 {offsets = [0, 72], sizes = [16, 8], strides = [1, 1]} : vector<16x96xf32> to vector<16x8xf32>
    %52 = vector.shape_cast %51 : vector<16x8xf32> to vector<2x8x8xf32>
    "tpu.trace_start"() <{level = 10 : i32, message = "bqd,bkd->bqk"}> : () -> ()
    %cst_25 = arith.constant dense<0.000000e+00> : vector<2x8x8xf32>
    %53 = tpu.matmul %48, %50, %cst_25 {dimension_numbers = #tpu.dot_dimension_numbers<[2], [2], [1], [1], [0, 0, 0, 1, 1, 1], [0], [0]>} : vector<2x8x8xf32>, vector<2x8x8xf32>, vector<2x8x8xf32> -> vector<2x8x8xf32>
    "tpu.trace_stop"() : () -> ()
    %cst_26 = arith.constant 0.353553385 : f32
    %54 = vector.broadcast %cst_26 : f32 to vector<2x8x8xf32>
    %55 = arith.mulf %53, %54 : vector<2x8x8xf32>
    %56 = arith.addf %55, %8 : vector<2x8x8xf32>
    %cst_27 = arith.constant dense<0xFF800000> : vector<2x8xf32>
    %57 = vector.multi_reduction <maximumf>, %56, %cst_27 [2] : vector<2x8x8xf32> to vector<2x8xf32>
    %58 = vector.shape_cast %57 : vector<2x8xf32> to vector<2x8x1xf32>
    %59 = vector.broadcast %58 : vector<2x8x1xf32> to vector<2x8x8xf32>
    %60 = arith.subf %56, %59 : vector<2x8x8xf32>
    %61 = math.exp %60 : vector<2x8x8xf32>
    %cst_28 = arith.constant dense<0.000000e+00> : vector<2x8xf32>
    %62 = vector.multi_reduction <add>, %61, %cst_28 [2] : vector<2x8x8xf32> to vector<2x8xf32>
    %63 = vector.shape_cast %62 : vector<2x8xf32> to vector<2x8x1xf32>
    %64 = tpu.reciprocal %63 {approx = true} : vector<2x8x1xf32> -> vector<2x8x1xf32>
    %65 = vector.broadcast %64 : vector<2x8x1xf32> to vector<2x8x8xf32>
    %66 = arith.mulf %61, %65 : vector<2x8x8xf32>
    "tpu.trace_start"() <{level = 10 : i32, message = "bqk,bkd->bqd"}> : () -> ()
    %cst_29 = arith.constant dense<0.000000e+00> : vector<2x8x8xf32>
    %67 = tpu.matmul %66, %52, %cst_29 {dimension_numbers = #tpu.dot_dimension_numbers<[2], [1], [1], [2], [0, 0, 0, 1, 1, 2], [0], [0]>} : vector<2x8x8xf32>, vector<2x8x8xf32>, vector<2x8x8xf32> -> vector<2x8x8xf32>
    "tpu.trace_stop"() : () -> ()
    %68 = vector.shape_cast %67 : vector<2x8x8xf32> to vector<16x8xf32>
    %69 = vector.extract_strided_slice %17 {offsets = [8, 0], sizes = [8, 32], strides = [1, 1]} : vector<32x32xf32> to vector<8x32xf32>
    %cst_30 = arith.constant dense<0.000000e+00> : vector<16x32xf32>
    %70 = tpu.matmul %68, %69, %cst_30 {dimension_numbers = #tpu.dot_dimension_numbers<[1], [0], [0], [1], [0, 0, 1, 1], [], []>} : vector<16x8xf32>, vector<8x32xf32>, vector<16x32xf32> -> vector<16x32xf32>
    %71 = arith.addf %46, %70 : vector<16x32xf32>
    %72 = vector.extract_strided_slice %15 {offsets = [0, 16], sizes = [16, 8], strides = [1, 1]} : vector<16x96xf32> to vector<16x8xf32>
    %73 = vector.shape_cast %72 : vector<16x8xf32> to vector<2x8x8xf32>
    %74 = vector.extract_strided_slice %15 {offsets = [0, 48], sizes = [16, 8], strides = [1, 1]} : vector<16x96xf32> to vector<16x8xf32>
    %75 = vector.shape_cast %74 : vector<16x8xf32> to vector<2x8x8xf32>
    %76 = vector.extract_strided_slice %15 {offsets = [0, 80], sizes = [16, 8], strides = [1, 1]} : vector<16x96xf32> to vector<16x8xf32>
    %77 = vector.shape_cast %76 : vector<16x8xf32> to vector<2x8x8xf32>
    "tpu.trace_start"() <{level = 10 : i32, message = "bqd,bkd->bqk"}> : () -> ()
    %cst_31 = arith.constant dense<0.000000e+00> : vector<2x8x8xf32>
    %78 = tpu.matmul %73, %75, %cst_31 {dimension_numbers = #tpu.dot_dimension_numbers<[2], [2], [1], [1], [0, 0, 0, 1, 1, 1], [0], [0]>} : vector<2x8x8xf32>, vector<2x8x8xf32>, vector<2x8x8xf32> -> vector<2x8x8xf32>
    "tpu.trace_stop"() : () -> ()
    %cst_32 = arith.constant 0.353553385 : f32
    %79 = vector.broadcast %cst_32 : f32 to vector<2x8x8xf32>
    %80 = arith.mulf %78, %79 : vector<2x8x8xf32>
    %81 = arith.addf %80, %8 : vector<2x8x8xf32>
    %cst_33 = arith.constant dense<0xFF800000> : vector<2x8xf32>
    %82 = vector.multi_reduction <maximumf>, %81, %cst_33 [2] : vector<2x8x8xf32> to vector<2x8xf32>
    %83 = vector.shape_cast %82 : vector<2x8xf32> to vector<2x8x1xf32>
    %84 = vector.broadcast %83 : vector<2x8x1xf32> to vector<2x8x8xf32>
    %85 = arith.subf %81, %84 : vector<2x8x8xf32>
    %86 = math.exp %85 : vector<2x8x8xf32>
    %cst_34 = arith.constant dense<0.000000e+00> : vector<2x8xf32>
    %87 = vector.multi_reduction <add>, %86, %cst_34 [2] : vector<2x8x8xf32> to vector<2x8xf32>
    %88 = vector.shape_cast %87 : vector<2x8xf32> to vector<2x8x1xf32>
    %89 = tpu.reciprocal %88 {approx = true} : vector<2x8x1xf32> -> vector<2x8x1xf32>
    %90 = vector.broadcast %89 : vector<2x8x1xf32> to vector<2x8x8xf32>
    %91 = arith.mulf %86, %90 : vector<2x8x8xf32>
    "tpu.trace_start"() <{level = 10 : i32, message = "bqk,bkd->bqd"}> : () -> ()
    %cst_35 = arith.constant dense<0.000000e+00> : vector<2x8x8xf32>
    %92 = tpu.matmul %91, %77, %cst_35 {dimension_numbers = #tpu.dot_dimension_numbers<[2], [1], [1], [2], [0, 0, 0, 1, 1, 2], [0], [0]>} : vector<2x8x8xf32>, vector<2x8x8xf32>, vector<2x8x8xf32> -> vector<2x8x8xf32>
    "tpu.trace_stop"() : () -> ()
    %93 = vector.shape_cast %92 : vector<2x8x8xf32> to vector<16x8xf32>
    %94 = vector.extract_strided_slice %17 {offsets = [16, 0], sizes = [8, 32], strides = [1, 1]} : vector<32x32xf32> to vector<8x32xf32>
    %cst_36 = arith.constant dense<0.000000e+00> : vector<16x32xf32>
    %95 = tpu.matmul %93, %94, %cst_36 {dimension_numbers = #tpu.dot_dimension_numbers<[1], [0], [0], [1], [0, 0, 1, 1], [], []>} : vector<16x8xf32>, vector<8x32xf32>, vector<16x32xf32> -> vector<16x32xf32>
    %96 = arith.addf %71, %95 : vector<16x32xf32>
    %97 = vector.extract_strided_slice %15 {offsets = [0, 24], sizes = [16, 8], strides = [1, 1]} : vector<16x96xf32> to vector<16x8xf32>
    %98 = vector.shape_cast %97 : vector<16x8xf32> to vector<2x8x8xf32>
    %99 = vector.extract_strided_slice %15 {offsets = [0, 56], sizes = [16, 8], strides = [1, 1]} : vector<16x96xf32> to vector<16x8xf32>
    %100 = vector.shape_cast %99 : vector<16x8xf32> to vector<2x8x8xf32>
    %101 = vector.extract_strided_slice %15 {offsets = [0, 88], sizes = [16, 8], strides = [1, 1]} : vector<16x96xf32> to vector<16x8xf32>
    %102 = vector.shape_cast %101 : vector<16x8xf32> to vector<2x8x8xf32>
    "tpu.trace_start"() <{level = 10 : i32, message = "bqd,bkd->bqk"}> : () -> ()
    %cst_37 = arith.constant dense<0.000000e+00> : vector<2x8x8xf32>
    %103 = tpu.matmul %98, %100, %cst_37 {dimension_numbers = #tpu.dot_dimension_numbers<[2], [2], [1], [1], [0, 0, 0, 1, 1, 1], [0], [0]>} : vector<2x8x8xf32>, vector<2x8x8xf32>, vector<2x8x8xf32> -> vector<2x8x8xf32>
    "tpu.trace_stop"() : () -> ()
    %cst_38 = arith.constant 0.353553385 : f32
    %104 = vector.broadcast %cst_38 : f32 to vector<2x8x8xf32>
    %105 = arith.mulf %103, %104 : vector<2x8x8xf32>
    %106 = arith.addf %105, %8 : vector<2x8x8xf32>
    %cst_39 = arith.constant dense<0xFF800000> : vector<2x8xf32>
    %107 = vector.multi_reduction <maximumf>, %106, %cst_39 [2] : vector<2x8x8xf32> to vector<2x8xf32>
    %108 = vector.shape_cast %107 : vector<2x8xf32> to vector<2x8x1xf32>
    %109 = vector.broadcast %108 : vector<2x8x1xf32> to vector<2x8x8xf32>
    %110 = arith.subf %106, %109 : vector<2x8x8xf32>
    %111 = math.exp %110 : vector<2x8x8xf32>
    %cst_40 = arith.constant dense<0.000000e+00> : vector<2x8xf32>
    %112 = vector.multi_reduction <add>, %111, %cst_40 [2] : vector<2x8x8xf32> to vector<2x8xf32>
    %113 = vector.shape_cast %112 : vector<2x8xf32> to vector<2x8x1xf32>
    %114 = tpu.reciprocal %113 {approx = true} : vector<2x8x1xf32> -> vector<2x8x1xf32>
    %115 = vector.broadcast %114 : vector<2x8x1xf32> to vector<2x8x8xf32>
    %116 = arith.mulf %111, %115 : vector<2x8x8xf32>
    "tpu.trace_start"() <{level = 10 : i32, message = "bqk,bkd->bqd"}> : () -> ()
    %cst_41 = arith.constant dense<0.000000e+00> : vector<2x8x8xf32>
    %117 = tpu.matmul %116, %102, %cst_41 {dimension_numbers = #tpu.dot_dimension_numbers<[2], [1], [1], [2], [0, 0, 0, 1, 1, 2], [0], [0]>} : vector<2x8x8xf32>, vector<2x8x8xf32>, vector<2x8x8xf32> -> vector<2x8x8xf32>
    "tpu.trace_stop"() : () -> ()
    %118 = vector.shape_cast %117 : vector<2x8x8xf32> to vector<16x8xf32>
    %119 = vector.extract_strided_slice %17 {offsets = [24, 0], sizes = [8, 32], strides = [1, 1]} : vector<32x32xf32> to vector<8x32xf32>
    %cst_42 = arith.constant dense<0.000000e+00> : vector<16x32xf32>
    %120 = tpu.matmul %118, %119, %cst_42 {dimension_numbers = #tpu.dot_dimension_numbers<[1], [0], [0], [1], [0, 0, 1, 1], [], []>} : vector<16x8xf32>, vector<8x32xf32>, vector<16x32xf32> -> vector<16x32xf32>
    %121 = arith.addf %96, %120 : vector<16x32xf32>
    %122 = arith.addf %1, %121 : vector<16x32xf32>
    %c0_43 = arith.constant 0 : index
    %c0_44 = arith.constant 0 : index
    %c0_45 = arith.constant 0 : index
    %123 = vector.load %arg12[%c0_43, %c0_44, %c0_45] : memref<2x1x32xf32, #tpu.memory_space<vmem>>, vector<1x1x32xf32>
    %124 = vector.shape_cast %123 : vector<1x1x32xf32> to vector<1x32xf32>
    %c0_46 = arith.constant 0 : index
    %c0_47 = arith.constant 0 : index
    %c0_48 = arith.constant 0 : index
    %125 = vector.load %arg13[%c0_46, %c0_47, %c0_48] : memref<2x1x32xf32, #tpu.memory_space<vmem>>, vector<1x1x32xf32>
    %126 = vector.shape_cast %125 : vector<1x1x32xf32> to vector<1x32xf32>
    %cst_49 = arith.constant dense<0.000000e+00> : vector<16xf32>
    %127 = vector.multi_reduction <add>, %122, %cst_49 [1] : vector<16x32xf32> to vector<16xf32>
    %128 = vector.shape_cast %127 : vector<16xf32> to vector<16x1xf32>
    %cst_50 = arith.constant 3.200000e+01 : f32
    %129 = vector.broadcast %cst_50 : f32 to vector<16x1xf32>
    %130 = arith.divf %128, %129 : vector<16x1xf32>
    %131 = vector.broadcast %130 : vector<16x1xf32> to vector<16x32xf32>
    %132 = arith.subf %122, %131 : vector<16x32xf32>
    %133 = arith.mulf %132, %132 : vector<16x32xf32>
    %cst_51 = arith.constant dense<0.000000e+00> : vector<16xf32>
    %134 = vector.multi_reduction <add>, %133, %cst_51 [1] : vector<16x32xf32> to vector<16xf32>
    %135 = vector.shape_cast %134 : vector<16xf32> to vector<16x1xf32>
    %cst_52 = arith.constant 3.200000e+01 : f32
    %136 = vector.broadcast %cst_52 : f32 to vector<16x1xf32>
    %137 = arith.divf %135, %136 : vector<16x1xf32>
    %138 = vector.broadcast %130 : vector<16x1xf32> to vector<16x32xf32>
    %139 = arith.subf %122, %138 : vector<16x32xf32>
    %cst_53 = arith.constant 9.99999974E-6 : f32
    %140 = vector.broadcast %cst_53 : f32 to vector<16x1xf32>
    %141 = arith.addf %137, %140 : vector<16x1xf32>
    %142 = math.rsqrt %141 : vector<16x1xf32>
    %143 = vector.broadcast %142 : vector<16x1xf32> to vector<16x32xf32>
    %144 = arith.mulf %139, %143 : vector<16x32xf32>
    %145 = vector.broadcast %124 : vector<1x32xf32> to vector<16x32xf32>
    %146 = arith.mulf %144, %145 : vector<16x32xf32>
    %147 = vector.broadcast %126 : vector<1x32xf32> to vector<16x32xf32>
    %148 = arith.addf %146, %147 : vector<16x32xf32>
    %c0_54 = arith.constant 0 : index
    %c0_55 = arith.constant 0 : index
    %c0_56 = arith.constant 0 : index
    %149 = vector.load %arg8[%c0_54, %c0_55, %c0_56] : memref<2x32x64xf32, #tpu.memory_space<vmem>>, vector<1x32x64xf32>
    %150 = vector.shape_cast %149 : vector<1x32x64xf32> to vector<32x64xf32>
    %cst_57 = arith.constant dense<0.000000e+00> : vector<16x64xf32>
    %151 = tpu.matmul %148, %150, %cst_57 {dimension_numbers = #tpu.dot_dimension_numbers<[1], [0], [0], [1], [0, 0, 1, 1], [], []>} : vector<16x32xf32>, vector<32x64xf32>, vector<16x64xf32> -> vector<16x64xf32>
    %c0_58 = arith.constant 0 : index
    %c0_59 = arith.constant 0 : index
    %c0_60 = arith.constant 0 : index
    %152 = vector.load %arg9[%c0_58, %c0_59, %c0_60] : memref<2x1x64xf32, #tpu.memory_space<vmem>>, vector<1x1x64xf32>
    %153 = vector.shape_cast %152 : vector<1x1x64xf32> to vector<1x64xf32>
    %154 = vector.broadcast %153 : vector<1x64xf32> to vector<16x64xf32>
    %155 = arith.addf %151, %154 : vector<16x64xf32>
    %156 = arith.mulf %155, %155 : vector<16x64xf32>
    %157 = arith.mulf %155, %156 : vector<16x64xf32>
    %cst_61 = arith.constant 4.471500e-02 : f32
    %158 = vector.broadcast %cst_61 : f32 to vector<16x64xf32>
    %159 = arith.mulf %158, %157 : vector<16x64xf32>
    %160 = arith.addf %155, %159 : vector<16x64xf32>
    %cst_62 = arith.constant 0.797884583 : f32
    %161 = vector.broadcast %cst_62 : f32 to vector<16x64xf32>
    %162 = arith.mulf %161, %160 : vector<16x64xf32>
    %163 = math.tanh %162 : vector<16x64xf32>
    %cst_63 = arith.constant 1.000000e+00 : f32
    %164 = vector.broadcast %cst_63 : f32 to vector<16x64xf32>
    %165 = arith.addf %164, %163 : vector<16x64xf32>
    %cst_64 = arith.constant 5.000000e-01 : f32
    %166 = vector.broadcast %cst_64 : f32 to vector<16x64xf32>
    %167 = arith.mulf %166, %165 : vector<16x64xf32>
    %168 = arith.mulf %155, %167 : vector<16x64xf32>
    %c0_65 = arith.constant 0 : index
    %c0_66 = arith.constant 0 : index
    %c0_67 = arith.constant 0 : index
    %169 = vector.load %arg10[%c0_65, %c0_66, %c0_67] : memref<2x64x32xf32, #tpu.memory_space<vmem>>, vector<1x64x32xf32>
    %170 = vector.shape_cast %169 : vector<1x64x32xf32> to vector<64x32xf32>
    %cst_68 = arith.constant dense<0.000000e+00> : vector<16x32xf32>
    %171 = tpu.matmul %168, %170, %cst_68 {dimension_numbers = #tpu.dot_dimension_numbers<[1], [0], [0], [1], [0, 0, 1, 1], [], []>} : vector<16x64xf32>, vector<64x32xf32>, vector<16x32xf32> -> vector<16x32xf32>
    %c0_69 = arith.constant 0 : index
    %c0_70 = arith.constant 0 : index
    %c0_71 = arith.constant 0 : index
    %172 = vector.load %arg11[%c0_69, %c0_70, %c0_71] : memref<2x1x32xf32, #tpu.memory_space<vmem>>, vector<1x1x32xf32>
    %173 = vector.shape_cast %172 : vector<1x1x32xf32> to vector<1x32xf32>
    %174 = vector.broadcast %173 : vector<1x32xf32> to vector<16x32xf32>
    %175 = arith.addf %171, %174 : vector<16x32xf32>
    %176 = arith.addf %148, %175 : vector<16x32xf32>
    %c0_72 = arith.constant 0 : index
    %c0_73 = arith.constant 0 : index
    %c0_74 = arith.constant 0 : index
    %177 = vector.load %arg14[%c0_72, %c0_73, %c0_74] : memref<2x1x32xf32, #tpu.memory_space<vmem>>, vector<1x1x32xf32>
    %178 = vector.shape_cast %177 : vector<1x1x32xf32> to vector<1x32xf32>
    %c0_75 = arith.constant 0 : index
    %c0_76 = arith.constant 0 : index
    %c0_77 = arith.constant 0 : index
    %179 = vector.load %arg15[%c0_75, %c0_76, %c0_77] : memref<2x1x32xf32, #tpu.memory_space<vmem>>, vector<1x1x32xf32>
    %180 = vector.shape_cast %179 : vector<1x1x32xf32> to vector<1x32xf32>
    %cst_78 = arith.constant dense<0.000000e+00> : vector<16xf32>
    %181 = vector.multi_reduction <add>, %176, %cst_78 [1] : vector<16x32xf32> to vector<16xf32>
    %182 = vector.shape_cast %181 : vector<16xf32> to vector<16x1xf32>
    %cst_79 = arith.constant 3.200000e+01 : f32
    %183 = vector.broadcast %cst_79 : f32 to vector<16x1xf32>
    %184 = arith.divf %182, %183 : vector<16x1xf32>
    %185 = vector.broadcast %184 : vector<16x1xf32> to vector<16x32xf32>
    %186 = arith.subf %176, %185 : vector<16x32xf32>
    %187 = arith.mulf %186, %186 : vector<16x32xf32>
    %cst_80 = arith.constant dense<0.000000e+00> : vector<16xf32>
    %188 = vector.multi_reduction <add>, %187, %cst_80 [1] : vector<16x32xf32> to vector<16xf32>
    %189 = vector.shape_cast %188 : vector<16xf32> to vector<16x1xf32>
    %cst_81 = arith.constant 3.200000e+01 : f32
    %190 = vector.broadcast %cst_81 : f32 to vector<16x1xf32>
    %191 = arith.divf %189, %190 : vector<16x1xf32>
    %192 = vector.broadcast %184 : vector<16x1xf32> to vector<16x32xf32>
    %193 = arith.subf %176, %192 : vector<16x32xf32>
    %cst_82 = arith.constant 9.99999974E-6 : f32
    %194 = vector.broadcast %cst_82 : f32 to vector<16x1xf32>
    %195 = arith.addf %191, %194 : vector<16x1xf32>
    %196 = math.rsqrt %195 : vector<16x1xf32>
    %197 = vector.broadcast %196 : vector<16x1xf32> to vector<16x32xf32>
    %198 = arith.mulf %193, %197 : vector<16x32xf32>
    %199 = vector.broadcast %178 : vector<1x32xf32> to vector<16x32xf32>
    %200 = arith.mulf %198, %199 : vector<16x32xf32>
    %201 = vector.broadcast %180 : vector<1x32xf32> to vector<16x32xf32>
    %202 = arith.addf %200, %201 : vector<16x32xf32>
    %c1 = arith.constant 1 : index
    %c0_83 = arith.constant 0 : index
    %c0_84 = arith.constant 0 : index
    %203 = vector.load %arg4[%c1, %c0_83, %c0_84] : memref<2x32x96xf32, #tpu.memory_space<vmem>>, vector<1x32x96xf32>
    %204 = vector.shape_cast %203 : vector<1x32x96xf32> to vector<32x96xf32>
    %cst_85 = arith.constant dense<0.000000e+00> : vector<16x96xf32>
    %205 = tpu.matmul %202, %204, %cst_85 {dimension_numbers = #tpu.dot_dimension_numbers<[1], [0], [0], [1], [0, 0, 1, 1], [], []>} : vector<16x32xf32>, vector<32x96xf32>, vector<16x96xf32> -> vector<16x96xf32>
    %c1_86 = arith.constant 1 : index
    %c0_87 = arith.constant 0 : index
    %c0_88 = arith.constant 0 : index
    %206 = vector.load %arg5[%c1_86, %c0_87, %c0_88] : memref<2x1x96xf32, #tpu.memory_space<vmem>>, vector<1x1x96xf32>
    %207 = vector.shape_cast %206 : vector<1x1x96xf32> to vector<1x96xf32>
    %208 = vector.broadcast %207 : vector<1x96xf32> to vector<16x96xf32>
    %209 = arith.addf %205, %208 : vector<16x96xf32>
    %c1_89 = arith.constant 1 : index
    %c0_90 = arith.constant 0 : index
    %c0_91 = arith.constant 0 : index
    %210 = vector.load %arg6[%c1_89, %c0_90, %c0_91] : memref<2x32x32xf32, #tpu.memory_space<vmem>>, vector<1x32x32xf32>
    %211 = vector.shape_cast %210 : vector<1x32x32xf32> to vector<32x32xf32>
    %c1_92 = arith.constant 1 : index
    %c0_93 = arith.constant 0 : index
    %c0_94 = arith.constant 0 : index
    %212 = vector.load %arg7[%c1_92, %c0_93, %c0_94] : memref<2x1x32xf32, #tpu.memory_space<vmem>>, vector<1x1x32xf32>
    %213 = vector.shape_cast %212 : vector<1x1x32xf32> to vector<1x32xf32>
    %214 = vector.shape_cast %213 : vector<1x32xf32> to vector<1x32xf32>
    %215 = vector.broadcast %214 : vector<1x32xf32> to vector<16x32xf32>
    %216 = vector.extract_strided_slice %209 {offsets = [0, 0], sizes = [16, 8], strides = [1, 1]} : vector<16x96xf32> to vector<16x8xf32>
    %217 = vector.shape_cast %216 : vector<16x8xf32> to vector<2x8x8xf32>
    %218 = vector.extract_strided_slice %209 {offsets = [0, 32], sizes = [16, 8], strides = [1, 1]} : vector<16x96xf32> to vector<16x8xf32>
    %219 = vector.shape_cast %218 : vector<16x8xf32> to vector<2x8x8xf32>
    %220 = vector.extract_strided_slice %209 {offsets = [0, 64], sizes = [16, 8], strides = [1, 1]} : vector<16x96xf32> to vector<16x8xf32>
    %221 = vector.shape_cast %220 : vector<16x8xf32> to vector<2x8x8xf32>
    "tpu.trace_start"() <{level = 10 : i32, message = "bqd,bkd->bqk"}> : () -> ()
    %cst_95 = arith.constant dense<0.000000e+00> : vector<2x8x8xf32>
    %222 = tpu.matmul %217, %219, %cst_95 {dimension_numbers = #tpu.dot_dimension_numbers<[2], [2], [1], [1], [0, 0, 0, 1, 1, 1], [0], [0]>} : vector<2x8x8xf32>, vector<2x8x8xf32>, vector<2x8x8xf32> -> vector<2x8x8xf32>
    "tpu.trace_stop"() : () -> ()
    %cst_96 = arith.constant 0.353553385 : f32
    %223 = vector.broadcast %cst_96 : f32 to vector<2x8x8xf32>
    %224 = arith.mulf %222, %223 : vector<2x8x8xf32>
    %225 = arith.addf %224, %8 : vector<2x8x8xf32>
    %cst_97 = arith.constant dense<0xFF800000> : vector<2x8xf32>
    %226 = vector.multi_reduction <maximumf>, %225, %cst_97 [2] : vector<2x8x8xf32> to vector<2x8xf32>
    %227 = vector.shape_cast %226 : vector<2x8xf32> to vector<2x8x1xf32>
    %228 = vector.broadcast %227 : vector<2x8x1xf32> to vector<2x8x8xf32>
    %229 = arith.subf %225, %228 : vector<2x8x8xf32>
    %230 = math.exp %229 : vector<2x8x8xf32>
    %cst_98 = arith.constant dense<0.000000e+00> : vector<2x8xf32>
    %231 = vector.multi_reduction <add>, %230, %cst_98 [2] : vector<2x8x8xf32> to vector<2x8xf32>
    %232 = vector.shape_cast %231 : vector<2x8xf32> to vector<2x8x1xf32>
    %233 = tpu.reciprocal %232 {approx = true} : vector<2x8x1xf32> -> vector<2x8x1xf32>
    %234 = vector.broadcast %233 : vector<2x8x1xf32> to vector<2x8x8xf32>
    %235 = arith.mulf %230, %234 : vector<2x8x8xf32>
    "tpu.trace_start"() <{level = 10 : i32, message = "bqk,bkd->bqd"}> : () -> ()
    %cst_99 = arith.constant dense<0.000000e+00> : vector<2x8x8xf32>
    %236 = tpu.matmul %235, %221, %cst_99 {dimension_numbers = #tpu.dot_dimension_numbers<[2], [1], [1], [2], [0, 0, 0, 1, 1, 2], [0], [0]>} : vector<2x8x8xf32>, vector<2x8x8xf32>, vector<2x8x8xf32> -> vector<2x8x8xf32>
    "tpu.trace_stop"() : () -> ()
    %237 = vector.shape_cast %236 : vector<2x8x8xf32> to vector<16x8xf32>
    %238 = vector.extract_strided_slice %211 {offsets = [0, 0], sizes = [8, 32], strides = [1, 1]} : vector<32x32xf32> to vector<8x32xf32>
    %cst_100 = arith.constant dense<0.000000e+00> : vector<16x32xf32>
    %239 = tpu.matmul %237, %238, %cst_100 {dimension_numbers = #tpu.dot_dimension_numbers<[1], [0], [0], [1], [0, 0, 1, 1], [], []>} : vector<16x8xf32>, vector<8x32xf32>, vector<16x32xf32> -> vector<16x32xf32>
    %240 = arith.addf %215, %239 : vector<16x32xf32>
    %241 = vector.extract_strided_slice %209 {offsets = [0, 8], sizes = [16, 8], strides = [1, 1]} : vector<16x96xf32> to vector<16x8xf32>
    %242 = vector.shape_cast %241 : vector<16x8xf32> to vector<2x8x8xf32>
    %243 = vector.extract_strided_slice %209 {offsets = [0, 40], sizes = [16, 8], strides = [1, 1]} : vector<16x96xf32> to vector<16x8xf32>
    %244 = vector.shape_cast %243 : vector<16x8xf32> to vector<2x8x8xf32>
    %245 = vector.extract_strided_slice %209 {offsets = [0, 72], sizes = [16, 8], strides = [1, 1]} : vector<16x96xf32> to vector<16x8xf32>
    %246 = vector.shape_cast %245 : vector<16x8xf32> to vector<2x8x8xf32>
    "tpu.trace_start"() <{level = 10 : i32, message = "bqd,bkd->bqk"}> : () -> ()
    %cst_101 = arith.constant dense<0.000000e+00> : vector<2x8x8xf32>
    %247 = tpu.matmul %242, %244, %cst_101 {dimension_numbers = #tpu.dot_dimension_numbers<[2], [2], [1], [1], [0, 0, 0, 1, 1, 1], [0], [0]>} : vector<2x8x8xf32>, vector<2x8x8xf32>, vector<2x8x8xf32> -> vector<2x8x8xf32>
    "tpu.trace_stop"() : () -> ()
    %cst_102 = arith.constant 0.353553385 : f32
    %248 = vector.broadcast %cst_102 : f32 to vector<2x8x8xf32>
    %249 = arith.mulf %247, %248 : vector<2x8x8xf32>
    %250 = arith.addf %249, %8 : vector<2x8x8xf32>
    %cst_103 = arith.constant dense<0xFF800000> : vector<2x8xf32>
    %251 = vector.multi_reduction <maximumf>, %250, %cst_103 [2] : vector<2x8x8xf32> to vector<2x8xf32>
    %252 = vector.shape_cast %251 : vector<2x8xf32> to vector<2x8x1xf32>
    %253 = vector.broadcast %252 : vector<2x8x1xf32> to vector<2x8x8xf32>
    %254 = arith.subf %250, %253 : vector<2x8x8xf32>
    %255 = math.exp %254 : vector<2x8x8xf32>
    %cst_104 = arith.constant dense<0.000000e+00> : vector<2x8xf32>
    %256 = vector.multi_reduction <add>, %255, %cst_104 [2] : vector<2x8x8xf32> to vector<2x8xf32>
    %257 = vector.shape_cast %256 : vector<2x8xf32> to vector<2x8x1xf32>
    %258 = tpu.reciprocal %257 {approx = true} : vector<2x8x1xf32> -> vector<2x8x1xf32>
    %259 = vector.broadcast %258 : vector<2x8x1xf32> to vector<2x8x8xf32>
    %260 = arith.mulf %255, %259 : vector<2x8x8xf32>
    "tpu.trace_start"() <{level = 10 : i32, message = "bqk,bkd->bqd"}> : () -> ()
    %cst_105 = arith.constant dense<0.000000e+00> : vector<2x8x8xf32>
    %261 = tpu.matmul %260, %246, %cst_105 {dimension_numbers = #tpu.dot_dimension_numbers<[2], [1], [1], [2], [0, 0, 0, 1, 1, 2], [0], [0]>} : vector<2x8x8xf32>, vector<2x8x8xf32>, vector<2x8x8xf32> -> vector<2x8x8xf32>
    "tpu.trace_stop"() : () -> ()
    %262 = vector.shape_cast %261 : vector<2x8x8xf32> to vector<16x8xf32>
    %263 = vector.extract_strided_slice %211 {offsets = [8, 0], sizes = [8, 32], strides = [1, 1]} : vector<32x32xf32> to vector<8x32xf32>
    %cst_106 = arith.constant dense<0.000000e+00> : vector<16x32xf32>
    %264 = tpu.matmul %262, %263, %cst_106 {dimension_numbers = #tpu.dot_dimension_numbers<[1], [0], [0], [1], [0, 0, 1, 1], [], []>} : vector<16x8xf32>, vector<8x32xf32>, vector<16x32xf32> -> vector<16x32xf32>
    %265 = arith.addf %240, %264 : vector<16x32xf32>
    %266 = vector.extract_strided_slice %209 {offsets = [0, 16], sizes = [16, 8], strides = [1, 1]} : vector<16x96xf32> to vector<16x8xf32>
    %267 = vector.shape_cast %266 : vector<16x8xf32> to vector<2x8x8xf32>
    %268 = vector.extract_strided_slice %209 {offsets = [0, 48], sizes = [16, 8], strides = [1, 1]} : vector<16x96xf32> to vector<16x8xf32>
    %269 = vector.shape_cast %268 : vector<16x8xf32> to vector<2x8x8xf32>
    %270 = vector.extract_strided_slice %209 {offsets = [0, 80], sizes = [16, 8], strides = [1, 1]} : vector<16x96xf32> to vector<16x8xf32>
    %271 = vector.shape_cast %270 : vector<16x8xf32> to vector<2x8x8xf32>
    "tpu.trace_start"() <{level = 10 : i32, message = "bqd,bkd->bqk"}> : () -> ()
    %cst_107 = arith.constant dense<0.000000e+00> : vector<2x8x8xf32>
    %272 = tpu.matmul %267, %269, %cst_107 {dimension_numbers = #tpu.dot_dimension_numbers<[2], [2], [1], [1], [0, 0, 0, 1, 1, 1], [0], [0]>} : vector<2x8x8xf32>, vector<2x8x8xf32>, vector<2x8x8xf32> -> vector<2x8x8xf32>
    "tpu.trace_stop"() : () -> ()
    %cst_108 = arith.constant 0.353553385 : f32
    %273 = vector.broadcast %cst_108 : f32 to vector<2x8x8xf32>
    %274 = arith.mulf %272, %273 : vector<2x8x8xf32>
    %275 = arith.addf %274, %8 : vector<2x8x8xf32>
    %cst_109 = arith.constant dense<0xFF800000> : vector<2x8xf32>
    %276 = vector.multi_reduction <maximumf>, %275, %cst_109 [2] : vector<2x8x8xf32> to vector<2x8xf32>
    %277 = vector.shape_cast %276 : vector<2x8xf32> to vector<2x8x1xf32>
    %278 = vector.broadcast %277 : vector<2x8x1xf32> to vector<2x8x8xf32>
    %279 = arith.subf %275, %278 : vector<2x8x8xf32>
    %280 = math.exp %279 : vector<2x8x8xf32>
    %cst_110 = arith.constant dense<0.000000e+00> : vector<2x8xf32>
    %281 = vector.multi_reduction <add>, %280, %cst_110 [2] : vector<2x8x8xf32> to vector<2x8xf32>
    %282 = vector.shape_cast %281 : vector<2x8xf32> to vector<2x8x1xf32>
    %283 = tpu.reciprocal %282 {approx = true} : vector<2x8x1xf32> -> vector<2x8x1xf32>
    %284 = vector.broadcast %283 : vector<2x8x1xf32> to vector<2x8x8xf32>
    %285 = arith.mulf %280, %284 : vector<2x8x8xf32>
    "tpu.trace_start"() <{level = 10 : i32, message = "bqk,bkd->bqd"}> : () -> ()
    %cst_111 = arith.constant dense<0.000000e+00> : vector<2x8x8xf32>
    %286 = tpu.matmul %285, %271, %cst_111 {dimension_numbers = #tpu.dot_dimension_numbers<[2], [1], [1], [2], [0, 0, 0, 1, 1, 2], [0], [0]>} : vector<2x8x8xf32>, vector<2x8x8xf32>, vector<2x8x8xf32> -> vector<2x8x8xf32>
    "tpu.trace_stop"() : () -> ()
    %287 = vector.shape_cast %286 : vector<2x8x8xf32> to vector<16x8xf32>
    %288 = vector.extract_strided_slice %211 {offsets = [16, 0], sizes = [8, 32], strides = [1, 1]} : vector<32x32xf32> to vector<8x32xf32>
    %cst_112 = arith.constant dense<0.000000e+00> : vector<16x32xf32>
    %289 = tpu.matmul %287, %288, %cst_112 {dimension_numbers = #tpu.dot_dimension_numbers<[1], [0], [0], [1], [0, 0, 1, 1], [], []>} : vector<16x8xf32>, vector<8x32xf32>, vector<16x32xf32> -> vector<16x32xf32>
    %290 = arith.addf %265, %289 : vector<16x32xf32>
    %291 = vector.extract_strided_slice %209 {offsets = [0, 24], sizes = [16, 8], strides = [1, 1]} : vector<16x96xf32> to vector<16x8xf32>
    %292 = vector.shape_cast %291 : vector<16x8xf32> to vector<2x8x8xf32>
    %293 = vector.extract_strided_slice %209 {offsets = [0, 56], sizes = [16, 8], strides = [1, 1]} : vector<16x96xf32> to vector<16x8xf32>
    %294 = vector.shape_cast %293 : vector<16x8xf32> to vector<2x8x8xf32>
    %295 = vector.extract_strided_slice %209 {offsets = [0, 88], sizes = [16, 8], strides = [1, 1]} : vector<16x96xf32> to vector<16x8xf32>
    %296 = vector.shape_cast %295 : vector<16x8xf32> to vector<2x8x8xf32>
    "tpu.trace_start"() <{level = 10 : i32, message = "bqd,bkd->bqk"}> : () -> ()
    %cst_113 = arith.constant dense<0.000000e+00> : vector<2x8x8xf32>
    %297 = tpu.matmul %292, %294, %cst_113 {dimension_numbers = #tpu.dot_dimension_numbers<[2], [2], [1], [1], [0, 0, 0, 1, 1, 1], [0], [0]>} : vector<2x8x8xf32>, vector<2x8x8xf32>, vector<2x8x8xf32> -> vector<2x8x8xf32>
    "tpu.trace_stop"() : () -> ()
    %cst_114 = arith.constant 0.353553385 : f32
    %298 = vector.broadcast %cst_114 : f32 to vector<2x8x8xf32>
    %299 = arith.mulf %297, %298 : vector<2x8x8xf32>
    %300 = arith.addf %299, %8 : vector<2x8x8xf32>
    %cst_115 = arith.constant dense<0xFF800000> : vector<2x8xf32>
    %301 = vector.multi_reduction <maximumf>, %300, %cst_115 [2] : vector<2x8x8xf32> to vector<2x8xf32>
    %302 = vector.shape_cast %301 : vector<2x8xf32> to vector<2x8x1xf32>
    %303 = vector.broadcast %302 : vector<2x8x1xf32> to vector<2x8x8xf32>
    %304 = arith.subf %300, %303 : vector<2x8x8xf32>
    %305 = math.exp %304 : vector<2x8x8xf32>
    %cst_116 = arith.constant dense<0.000000e+00> : vector<2x8xf32>
    %306 = vector.multi_reduction <add>, %305, %cst_116 [2] : vector<2x8x8xf32> to vector<2x8xf32>
    %307 = vector.shape_cast %306 : vector<2x8xf32> to vector<2x8x1xf32>
    %308 = tpu.reciprocal %307 {approx = true} : vector<2x8x1xf32> -> vector<2x8x1xf32>
    %309 = vector.broadcast %308 : vector<2x8x1xf32> to vector<2x8x8xf32>
    %310 = arith.mulf %305, %309 : vector<2x8x8xf32>
    "tpu.trace_start"() <{level = 10 : i32, message = "bqk,bkd->bqd"}> : () -> ()
    %cst_117 = arith.constant dense<0.000000e+00> : vector<2x8x8xf32>
    %311 = tpu.matmul %310, %296, %cst_117 {dimension_numbers = #tpu.dot_dimension_numbers<[2], [1], [1], [2], [0, 0, 0, 1, 1, 2], [0], [0]>} : vector<2x8x8xf32>, vector<2x8x8xf32>, vector<2x8x8xf32> -> vector<2x8x8xf32>
    "tpu.trace_stop"() : () -> ()
    %312 = vector.shape_cast %311 : vector<2x8x8xf32> to vector<16x8xf32>
    %313 = vector.extract_strided_slice %211 {offsets = [24, 0], sizes = [8, 32], strides = [1, 1]} : vector<32x32xf32> to vector<8x32xf32>
    %cst_118 = arith.constant dense<0.000000e+00> : vector<16x32xf32>
    %314 = tpu.matmul %312, %313, %cst_118 {dimension_numbers = #tpu.dot_dimension_numbers<[1], [0], [0], [1], [0, 0, 1, 1], [], []>} : vector<16x8xf32>, vector<8x32xf32>, vector<16x32xf32> -> vector<16x32xf32>
    %315 = arith.addf %290, %314 : vector<16x32xf32>
    %316 = arith.addf %202, %315 : vector<16x32xf32>
    %c1_119 = arith.constant 1 : index
    %c0_120 = arith.constant 0 : index
    %c0_121 = arith.constant 0 : index
    %317 = vector.load %arg12[%c1_119, %c0_120, %c0_121] : memref<2x1x32xf32, #tpu.memory_space<vmem>>, vector<1x1x32xf32>
    %318 = vector.shape_cast %317 : vector<1x1x32xf32> to vector<1x32xf32>
    %c1_122 = arith.constant 1 : index
    %c0_123 = arith.constant 0 : index
    %c0_124 = arith.constant 0 : index
    %319 = vector.load %arg13[%c1_122, %c0_123, %c0_124] : memref<2x1x32xf32, #tpu.memory_space<vmem>>, vector<1x1x32xf32>
    %320 = vector.shape_cast %319 : vector<1x1x32xf32> to vector<1x32xf32>
    %cst_125 = arith.constant dense<0.000000e+00> : vector<16xf32>
    %321 = vector.multi_reduction <add>, %316, %cst_125 [1] : vector<16x32xf32> to vector<16xf32>
    %322 = vector.shape_cast %321 : vector<16xf32> to vector<16x1xf32>
    %cst_126 = arith.constant 3.200000e+01 : f32
    %323 = vector.broadcast %cst_126 : f32 to vector<16x1xf32>
    %324 = arith.divf %322, %323 : vector<16x1xf32>
    %325 = vector.broadcast %324 : vector<16x1xf32> to vector<16x32xf32>
    %326 = arith.subf %316, %325 : vector<16x32xf32>
    %327 = arith.mulf %326, %326 : vector<16x32xf32>
    %cst_127 = arith.constant dense<0.000000e+00> : vector<16xf32>
    %328 = vector.multi_reduction <add>, %327, %cst_127 [1] : vector<16x32xf32> to vector<16xf32>
    %329 = vector.shape_cast %328 : vector<16xf32> to vector<16x1xf32>
    %cst_128 = arith.constant 3.200000e+01 : f32
    %330 = vector.broadcast %cst_128 : f32 to vector<16x1xf32>
    %331 = arith.divf %329, %330 : vector<16x1xf32>
    %332 = vector.broadcast %324 : vector<16x1xf32> to vector<16x32xf32>
    %333 = arith.subf %316, %332 : vector<16x32xf32>
    %cst_129 = arith.constant 9.99999974E-6 : f32
    %334 = vector.broadcast %cst_129 : f32 to vector<16x1xf32>
    %335 = arith.addf %331, %334 : vector<16x1xf32>
    %336 = math.rsqrt %335 : vector<16x1xf32>
    %337 = vector.broadcast %336 : vector<16x1xf32> to vector<16x32xf32>
    %338 = arith.mulf %333, %337 : vector<16x32xf32>
    %339 = vector.broadcast %318 : vector<1x32xf32> to vector<16x32xf32>
    %340 = arith.mulf %338, %339 : vector<16x32xf32>
    %341 = vector.broadcast %320 : vector<1x32xf32> to vector<16x32xf32>
    %342 = arith.addf %340, %341 : vector<16x32xf32>
    %c1_130 = arith.constant 1 : index
    %c0_131 = arith.constant 0 : index
    %c0_132 = arith.constant 0 : index
    %343 = vector.load %arg8[%c1_130, %c0_131, %c0_132] : memref<2x32x64xf32, #tpu.memory_space<vmem>>, vector<1x32x64xf32>
    %344 = vector.shape_cast %343 : vector<1x32x64xf32> to vector<32x64xf32>
    %cst_133 = arith.constant dense<0.000000e+00> : vector<16x64xf32>
    %345 = tpu.matmul %342, %344, %cst_133 {dimension_numbers = #tpu.dot_dimension_numbers<[1], [0], [0], [1], [0, 0, 1, 1], [], []>} : vector<16x32xf32>, vector<32x64xf32>, vector<16x64xf32> -> vector<16x64xf32>
    %c1_134 = arith.constant 1 : index
    %c0_135 = arith.constant 0 : index
    %c0_136 = arith.constant 0 : index
    %346 = vector.load %arg9[%c1_134, %c0_135, %c0_136] : memref<2x1x64xf32, #tpu.memory_space<vmem>>, vector<1x1x64xf32>
    %347 = vector.shape_cast %346 : vector<1x1x64xf32> to vector<1x64xf32>
    %348 = vector.broadcast %347 : vector<1x64xf32> to vector<16x64xf32>
    %349 = arith.addf %345, %348 : vector<16x64xf32>
    %350 = arith.mulf %349, %349 : vector<16x64xf32>
    %351 = arith.mulf %349, %350 : vector<16x64xf32>
    %cst_137 = arith.constant 4.471500e-02 : f32
    %352 = vector.broadcast %cst_137 : f32 to vector<16x64xf32>
    %353 = arith.mulf %352, %351 : vector<16x64xf32>
    %354 = arith.addf %349, %353 : vector<16x64xf32>
    %cst_138 = arith.constant 0.797884583 : f32
    %355 = vector.broadcast %cst_138 : f32 to vector<16x64xf32>
    %356 = arith.mulf %355, %354 : vector<16x64xf32>
    %357 = math.tanh %356 : vector<16x64xf32>
    %cst_139 = arith.constant 1.000000e+00 : f32
    %358 = vector.broadcast %cst_139 : f32 to vector<16x64xf32>
    %359 = arith.addf %358, %357 : vector<16x64xf32>
    %cst_140 = arith.constant 5.000000e-01 : f32
    %360 = vector.broadcast %cst_140 : f32 to vector<16x64xf32>
    %361 = arith.mulf %360, %359 : vector<16x64xf32>
    %362 = arith.mulf %349, %361 : vector<16x64xf32>
    %c1_141 = arith.constant 1 : index
    %c0_142 = arith.constant 0 : index
    %c0_143 = arith.constant 0 : index
    %363 = vector.load %arg10[%c1_141, %c0_142, %c0_143] : memref<2x64x32xf32, #tpu.memory_space<vmem>>, vector<1x64x32xf32>
    %364 = vector.shape_cast %363 : vector<1x64x32xf32> to vector<64x32xf32>
    %cst_144 = arith.constant dense<0.000000e+00> : vector<16x32xf32>
    %365 = tpu.matmul %362, %364, %cst_144 {dimension_numbers = #tpu.dot_dimension_numbers<[1], [0], [0], [1], [0, 0, 1, 1], [], []>} : vector<16x64xf32>, vector<64x32xf32>, vector<16x32xf32> -> vector<16x32xf32>
    %c1_145 = arith.constant 1 : index
    %c0_146 = arith.constant 0 : index
    %c0_147 = arith.constant 0 : index
    %366 = vector.load %arg11[%c1_145, %c0_146, %c0_147] : memref<2x1x32xf32, #tpu.memory_space<vmem>>, vector<1x1x32xf32>
    %367 = vector.shape_cast %366 : vector<1x1x32xf32> to vector<1x32xf32>
    %368 = vector.broadcast %367 : vector<1x32xf32> to vector<16x32xf32>
    %369 = arith.addf %365, %368 : vector<16x32xf32>
    %370 = arith.addf %342, %369 : vector<16x32xf32>
    %c1_148 = arith.constant 1 : index
    %c0_149 = arith.constant 0 : index
    %c0_150 = arith.constant 0 : index
    %371 = vector.load %arg14[%c1_148, %c0_149, %c0_150] : memref<2x1x32xf32, #tpu.memory_space<vmem>>, vector<1x1x32xf32>
    %372 = vector.shape_cast %371 : vector<1x1x32xf32> to vector<1x32xf32>
    %c1_151 = arith.constant 1 : index
    %c0_152 = arith.constant 0 : index
    %c0_153 = arith.constant 0 : index
    %373 = vector.load %arg15[%c1_151, %c0_152, %c0_153] : memref<2x1x32xf32, #tpu.memory_space<vmem>>, vector<1x1x32xf32>
    %374 = vector.shape_cast %373 : vector<1x1x32xf32> to vector<1x32xf32>
    %cst_154 = arith.constant dense<0.000000e+00> : vector<16xf32>
    %375 = vector.multi_reduction <add>, %370, %cst_154 [1] : vector<16x32xf32> to vector<16xf32>
    %376 = vector.shape_cast %375 : vector<16xf32> to vector<16x1xf32>
    %cst_155 = arith.constant 3.200000e+01 : f32
    %377 = vector.broadcast %cst_155 : f32 to vector<16x1xf32>
    %378 = arith.divf %376, %377 : vector<16x1xf32>
    %379 = vector.broadcast %378 : vector<16x1xf32> to vector<16x32xf32>
    %380 = arith.subf %370, %379 : vector<16x32xf32>
    %381 = arith.mulf %380, %380 : vector<16x32xf32>
    %cst_156 = arith.constant dense<0.000000e+00> : vector<16xf32>
    %382 = vector.multi_reduction <add>, %381, %cst_156 [1] : vector<16x32xf32> to vector<16xf32>
    %383 = vector.shape_cast %382 : vector<16xf32> to vector<16x1xf32>
    %cst_157 = arith.constant 3.200000e+01 : f32
    %384 = vector.broadcast %cst_157 : f32 to vector<16x1xf32>
    %385 = arith.divf %383, %384 : vector<16x1xf32>
    %386 = vector.broadcast %378 : vector<16x1xf32> to vector<16x32xf32>
    %387 = arith.subf %370, %386 : vector<16x32xf32>
    %cst_158 = arith.constant 9.99999974E-6 : f32
    %388 = vector.broadcast %cst_158 : f32 to vector<16x1xf32>
    %389 = arith.addf %385, %388 : vector<16x1xf32>
    %390 = math.rsqrt %389 : vector<16x1xf32>
    %391 = vector.broadcast %390 : vector<16x1xf32> to vector<16x32xf32>
    %392 = arith.mulf %387, %391 : vector<16x32xf32>
    %393 = vector.broadcast %372 : vector<1x32xf32> to vector<16x32xf32>
    %394 = arith.mulf %392, %393 : vector<16x32xf32>
    %395 = vector.broadcast %374 : vector<1x32xf32> to vector<16x32xf32>
    %396 = arith.addf %394, %395 : vector<16x32xf32>
    %c0_159 = arith.constant 0 : index
    %397 = memref.load %arg1[%c0_159] : memref<2xi32, #tpu.memory_space<smem>>
    %c0_i32 = arith.constant 0 : i32
    %c7_i32 = arith.constant 7 : i32
    %398 = arith.maxsi %c0_i32, %397 : i32
    %399 = arith.minsi %c7_i32, %398 : i32
    %400 = vector.shape_cast %396 : vector<16x32xf32> to vector<2x8x32xf32>
    %401 = tpu.iota {dimensions = array<i32: 1>} : vector<2x8x1xi32>
    %402 = vector.broadcast %399 : i32 to vector<2x8x1xi32>
    %403 = arith.cmpi eq, %401, %402 : vector<2x8x1xi32>
    %404 = arith.extui %403 : vector<2x8x1xi1> to vector<2x8x1xi32>
    %405 = arith.sitofp %404 : vector<2x8x1xi32> to vector<2x8x1xf32>
    %406 = vector.broadcast %405 : vector<2x8x1xf32> to vector<2x8x32xf32>
    %407 = arith.mulf %400, %406 : vector<2x8x32xf32>
    %cst_160 = arith.constant dense<0.000000e+00> : vector<2x32xf32>
    %408 = vector.multi_reduction <add>, %407, %cst_160 [1] : vector<2x8x32xf32> to vector<2x32xf32>
    %c0_161 = arith.constant 0 : index
    %c0_162 = arith.constant 0 : index
    %409 = vector.load %arg16[%c0_161, %c0_162] : memref<32x3xf32, #tpu.memory_space<vmem>>, vector<32x3xf32>
    %cst_163 = arith.constant dense<0.000000e+00> : vector<2x3xf32>
    %410 = tpu.matmul %408, %409, %cst_163 {dimension_numbers = #tpu.dot_dimension_numbers<[1], [0], [0], [1], [0, 0, 1, 1], [], []>} : vector<2x32xf32>, vector<32x3xf32>, vector<2x3xf32> -> vector<2x3xf32>
    %cst_164 = arith.constant dense<0xFF800000> : vector<2xf32>
    %411 = vector.multi_reduction <maximumf>, %410, %cst_164 [1] : vector<2x3xf32> to vector<2xf32>
    %412 = vector.shape_cast %411 : vector<2xf32> to vector<2x1xf32>
    %413 = vector.broadcast %412 : vector<2x1xf32> to vector<2x3xf32>
    %414 = arith.subf %410, %413 : vector<2x3xf32>
    %415 = math.exp %414 : vector<2x3xf32>
    %cst_165 = arith.constant dense<0.000000e+00> : vector<2xf32>
    %416 = vector.multi_reduction <add>, %415, %cst_165 [1] : vector<2x3xf32> to vector<2xf32>
    %417 = vector.shape_cast %416 : vector<2xf32> to vector<2x1xf32>
    %418 = tpu.reciprocal %417 {approx = true} : vector<2x1xf32> -> vector<2x1xf32>
    %419 = vector.broadcast %418 : vector<2x1xf32> to vector<2x3xf32>
    %420 = arith.mulf %415, %419 : vector<2x3xf32>
    %c0_166 = arith.constant 0 : index
    %c0_167 = arith.constant 0 : index
    %421 = vector.load %arg17[%c0_166, %c0_167] : memref<2x3xf32, #tpu.memory_space<vmem>>, vector<2x3xf32>
    tpu.vector_store %arg17[%c0_166, %c0_167], %420 {strides = array<i32>} : memref<2x3xf32, #tpu.memory_space<vmem>>, vector<2x3xf32>,
    return
  }
  func.func @transform_0(%arg0: i32, %arg1: memref<2xi32, #tpu.memory_space<smem>>) -> (i32, i32, i32) {
    %c0_i32 = arith.constant 0 : i32
    %c0_i32_0 = arith.constant 0 : i32
    %c0_i32_1 = arith.constant 0 : i32
    %c0_i32_2 = arith.constant 0 : i32
    return %c0_i32, %c0_i32_0, %c0_i32_1 : i32, i32, i32
  }
  func.func @transform_1(%arg0: i32, %arg1: memref<2xi32, #tpu.memory_space<smem>>) -> (i32, i32, i32) {
    %c0_i32 = arith.constant 0 : i32
    %c0_i32_0 = arith.constant 0 : i32
    %c0_i32_1 = arith.constant 0 : i32
    %c0_i32_2 = arith.constant 0 : i32
    return %c0_i32, %c0_i32_0, %c0_i32_1 : i32, i32, i32
  }
  func.func @transform_2(%arg0: i32, %arg1: memref<2xi32, #tpu.memory_space<smem>>) -> (i32, i32, i32) {
    %c0_i32 = arith.constant 0 : i32
    %c0_i32_0 = arith.constant 0 : i32
    %c0_i32_1 = arith.constant 0 : i32
    %c0_i32_2 = arith.constant 0 : i32
    return %c0_i32, %c0_i32_0, %c0_i32_1 : i32, i32, i32
  }
  func.func @transform_3(%arg0: i32, %arg1: memref<2xi32, #tpu.memory_space<smem>>) -> (i32, i32, i32) {
    %c0_i32 = arith.constant 0 : i32
    %c0_i32_0 = arith.constant 0 : i32
    %c0_i32_1 = arith.constant 0 : i32
    %c0_i32_2 = arith.constant 0 : i32
    return %c0_i32, %c0_i32_0, %c0_i32_1 : i32, i32, i32
  }
  func.func @transform_4(%arg0: i32, %arg1: memref<2xi32, #tpu.memory_space<smem>>) -> (i32, i32, i32) {
    %c0_i32 = arith.constant 0 : i32
    %c0_i32_0 = arith.constant 0 : i32
    %c0_i32_1 = arith.constant 0 : i32
    %c0_i32_2 = arith.constant 0 : i32
    return %c0_i32, %c0_i32_0, %c0_i32_1 : i32, i32, i32
  }
  func.func @transform_5(%arg0: i32, %arg1: memref<2xi32, #tpu.memory_space<smem>>) -> (i32, i32, i32) {
    %c0_i32 = arith.constant 0 : i32
    %c0_i32_0 = arith.constant 0 : i32
    %c0_i32_1 = arith.constant 0 : i32
    %c0_i32_2 = arith.constant 0 : i32
    return %c0_i32, %c0_i32_0, %c0_i32_1 : i32, i32, i32
  }
  func.func @transform_6(%arg0: i32, %arg1: memref<2xi32, #tpu.memory_space<smem>>) -> (i32, i32, i32) {
    %c0_i32 = arith.constant 0 : i32
    %c0_i32_0 = arith.constant 0 : i32
    %c0_i32_1 = arith.constant 0 : i32
    %c0_i32_2 = arith.constant 0 : i32
    return %c0_i32, %c0_i32_0, %c0_i32_1 : i32, i32, i32
  }
  func.func @transform_7(%arg0: i32, %arg1: memref<2xi32, #tpu.memory_space<smem>>) -> (i32, i32, i32) {
    %c0_i32 = arith.constant 0 : i32
    %c0_i32_0 = arith.constant 0 : i32
    %c0_i32_1 = arith.constant 0 : i32
    %c0_i32_2 = arith.constant 0 : i32
    return %c0_i32, %c0_i32_0, %c0_i32_1 : i32, i32, i32
  }
  func.func @transform_8(%arg0: i32, %arg1: memref<2xi32, #tpu.memory_space<smem>>) -> (i32, i32, i32) {
    %c0_i32 = arith.constant 0 : i32
    %c0_i32_0 = arith.constant 0 : i32
    %c0_i32_1 = arith.constant 0 : i32
    %c0_i32_2 = arith.constant 0 : i32
    return %c0_i32, %c0_i32_0, %c0_i32_1 : i32, i32, i32
  }
  func.func @transform_9(%arg0: i32, %arg1: memref<2xi32, #tpu.memory_space<smem>>) -> (i32, i32, i32) {
    %c0_i32 = arith.constant 0 : i32
    %c0_i32_0 = arith.constant 0 : i32
    %c0_i32_1 = arith.constant 0 : i32
    %c0_i32_2 = arith.constant 0 : i32
    return %c0_i32, %c0_i32_0, %c0_i32_1 : i32, i32, i32
  }
  func.func @transform_10(%arg0: i32, %arg1: memref<2xi32, #tpu.memory_space<smem>>) -> (i32, i32, i32) {
    %c0_i32 = arith.constant 0 : i32
    %c0_i32_0 = arith.constant 0 : i32
    %c0_i32_1 = arith.constant 0 : i32
    %c0_i32_2 = arith.constant 0 : i32
    return %c0_i32, %c0_i32_0, %c0_i32_1 : i32, i32, i32
  }
  func.func @transform_11(%arg0: i32, %arg1: memref<2xi32, #tpu.memory_space<smem>>) -> (i32, i32, i32) {
    %c0_i32 = arith.constant 0 : i32
    %c0_i32_0 = arith.constant 0 : i32
    %c0_i32_1 = arith.constant 0 : i32
    %c0_i32_2 = arith.constant 0 : i32
    return %c0_i32, %c0_i32_0, %c0_i32_1 : i32, i32, i32
  }
  func.func @transform_12(%arg0: i32, %arg1: memref<2xi32, #tpu.memory_space<smem>>) -> (i32, i32, i32) {
    %c0_i32 = arith.constant 0 : i32
    %c0_i32_0 = arith.constant 0 : i32
    %c0_i32_1 = arith.constant 0 : i32
    %c0_i32_2 = arith.constant 0 : i32
    return %c0_i32, %c0_i32_0, %c0_i32_1 : i32, i32, i32
  }
  func.func @transform_13(%arg0: i32, %arg1: memref<2xi32, #tpu.memory_space<smem>>) -> (i32, i32, i32) {
    %c0_i32 = arith.constant 0 : i32
    %c0_i32_0 = arith.constant 0 : i32
    %c0_i32_1 = arith.constant 0 : i32
    %c0_i32_2 = arith.constant 0 : i32
    return %c0_i32, %c0_i32_0, %c0_i32_1 : i32, i32, i32
  }
  func.func @transform_14(%arg0: i32, %arg1: memref<2xi32, #tpu.memory_space<smem>>) -> (i32, i32) {
    %c0_i32 = arith.constant 0 : i32
    %c0_i32_0 = arith.constant 0 : i32
    %c0_i32_1 = arith.constant 0 : i32
    return %c0_i32, %c0_i32_0 : i32, i32
  }
  func.func @transform_15(%arg0: i32, %arg1: memref<2xi32, #tpu.memory_space<smem>>) -> (i32, i32) {
    %c0_i32 = arith.constant 0 : i32
    %c0_i32_0 = arith.constant 0 : i32
    %c0_i32_1 = arith.constant 0 : i32
    return %c0_i32, %c0_i32_0 : i32, i32
  }
}

</mosaic_0001>

<bundles_post_ra>
// kernel: tpu_custom_call.1
= control target key start
LH: loop header
LB: loop body
LE: loop exit
PB: predicated region body
PF: predicated region fallthrough
CT: control target
= control target key end

     0   :  { %s5767_s0 = inlined_call_operand.vmem [shape: s32[2], index: 0, kind: input, shape index: {}]   ;;  %s5768_s1 = inlined_call_operand.vmem [shape: f32[2,8,32], index: 1, kind: input, shape index: {}]   ;;  %s5769_s2 = inlined_call_operand.vmem [shape: f32[2,1,8], index: 2, kind: input, shape index: {}]   ;;  %s5770_s3 = inlined_call_operand.vmem [shape: f32[2,32,96], index: 3, kind: input, shape index: {}]   ;;  %s5771_s4 = inlined_call_operand.vmem [shape: f32[2,1,96], index: 4, kind: input, shape index: {}]   ;;  %s5772_s5 = inlined_call_operand.vmem [shape: f32[2,32,32], index: 5, kind: input, shape index: {}]   ;;  %s5773_s6 = inlined_call_operand.vmem [shape: f32[2,1,32], index: 6, kind: input, shape index: {}]   ;;  %s5774_s7 = inlined_call_operand.vmem [shape: f32[2,32,64], index: 7, kind: input, shape index: {}]   ;;  %s5775_s8 = inlined_call_operand.vmem [shape: f32[2,1,64], index: 8, kind: input, shape index: {}]   ;;  %s5776_s9 = inlined_call_operand.vmem [shape: f32[2,64,32], index: 9, kind: input, shape index: {}]   ;;  %s5777_s10 = inlined_call_operand.vmem [shape: f32[2,1,32], index: 10, kind: input, shape index: {}]   ;;  %s5778_s11 = inlined_call_operand.vmem [shape: f32[2,1,32], index: 11, kind: input, shape index: {}]   ;;  %s5779_s12 = inlined_call_operand.vmem [shape: f32[2,1,32], index: 12, kind: input, shape index: {}]   ;;  %s5780_s13 = inlined_call_operand.vmem [shape: f32[2,1,32], index: 13, kind: input, shape index: {}]   ;;  %s5781_s14 = inlined_call_operand.vmem [shape: f32[2,1,32], index: 14, kind: input, shape index: {}]   ;;  %s5782_s15 = inlined_call_operand.vmem [shape: f32[32,3], index: 15, kind: input, shape index: {}]   ;;  %s5783_s16 = inlined_call_operand.hbm [shape: f32[2,3], index: 16, kind: output, shape index: {}]  }
   0x1   :  { %5789 = sst [smem:[#allocation8_spill]] %s5767_s0 }
   0x2   :  { %5790 = sst [smem:[#allocation9_spill]] %s5777_s10 }
   0x3   :  { %s5791_s23 = sld [smem:[#allocation8_spill]] }
   0x9   :  { %s21_s10 = sshll.u32 %s5791_s23, 4  ;;  %s22_s10 = int_to_ptr.vmem [resolvable:$true] %s21_s10 }
   0xa   :  { %s5028_s24 = scalar_lea.vmem %s22_s10, 16  ;;  %p5033_p1 = scmp.lt.s32.totalorder %s22_s10, %s22_s10 }
   0xb   :  { %p5029_p0 = scmp.ne.s32.totalorder %s22_s10, %s5028_s24  ;;  %p5034_p2 = scmp.lt.s32.totalorder %s5028_s24, %s5028_s24 }
   0xd   :  { %p5035_p3 = por %p5034_p2, %p5033_p1 }
   0xf   :  { %p5036_p4 = pnand %p5035_p3, %p5029_p0 }
  0x11   :  { %5039 = shalt.err (!%p5036_p4)  }
  0x12   :  { %s5064_s25 = smov [#allocation3]  }
  0x13   :  { %24 = dma.vmem_to_smem %s22_s10, 16, %s5064_s25, [#allocation2] }
  0x14   :  { %5060 = dma.done.wait [#allocation2], 16 }
  0x15   :  { %5061 = vsyncadd [#allocation2], 4294967280 }
  0x16   :  { %26 = sfence }
  0x17   :  { %v81_v0 = vld [vmem:[%s5770_s3 + $0x18] sm:$0xff]  ;;  %v80_v1 = vld [vmem:[%s5770_s3 + $0x10] sm:$0xff]  ;;  %vm89_vm0 = vcmask 261120   ;;  %v5176_v2 = vld [vmem:[%s5768_s1] sm:$0xff] }
  0x18   :  { %4628 = vmatprep.subr.mxu0 %v81_v0  ;;  %v79_v3 = vld [vmem:[%s5770_s3 + $0x8] sm:$0xff]  ;;  %4636 = vmatprep.mubr.msk.f32.mxu0 %vm89_vm0, %v5176_v2 }
  0x19   :  { %4629 = vmatpush3.msra.mxu0 %v81_v0 }
  0x1a   :  { %27 = vsyncpa [#allocation5], 0  ;;  %4630 = vmatprep.subr.mxu0 %v80_v1  ;;  %v78_v4 = vld [vmem:[%s5770_s3] sm:$0xff]  ;;  %v5189_v5 = vld [vmem:[%s5768_s1 + $0x8] sm:$0xff]  ;;  %v5065_v6 = vmov 0.0   ;;  %vm5066_vm1 = vmmov 0   ;;  %v68_v14 = vlaneseq }
  0x1b   :  { %4631 = vmatpush3.msra.mxu0 %v80_v1  ;;  %4639 = vmatprep.subr.mxu1 %v5065_v6  ;;  %v4362_v8 = vld [vmem:[%s5771_s4] ss:$0 sm:$0xff]  ;;  %s5067_s23 = smov 96   ;;  %vm185_vm2 = vcmask 64512   ;;  %v61_v18 = vld [vmem:[%s5769_s2 + $0x1] sm:$0x1] }
  0x1c   :  { %4632 = vmatprep.subr.mxu0 %v79_v3  ;;  %4641 = vmatprep.mubr.msk.f32.mxu1 %vm5066_vm1, %v5065_v6  ;;  %v60_v15 = vld [vmem:[%s5769_s2] sm:$0x1]  ;;  %v5225_v17 = vshrl.u32 %v68_v14, 7  ;;  %v63_v21 = vsub.f32 1.0, %v61_v18  ;;  %s5068_s2 = smov 64   ;;  %s5069_s28 = smov 120  }
  0x1d   :  { %4633 = vmatpush3.msra.mxu0 %v79_v3  ;;  %v62_v16 = vsub.f32 1.0, %v60_v15  ;;  %s5070_s29 = smov 88   ;;  %v171_v55 = vld [vmem:[%s5772_s5] sm:$0xff]  ;;  %s5071_s10 = smov 56   ;;  %vm2021_vm3 = vcmask 523264   ;;  %vm4261_vm5 = vcmask 1041409  }
  0x1e   :  { %4634 = vmatprep.subr.mxu0 %v78_v4  ;;  %v70_v20 = vsub.s32 0, %v5225_v17  ;;  %v65_v23 = vmul.f32 -1e+09, %v63_v21  ;;  %s5072_s17 = smov 112   ;;  %s5073_s18 = smov 80   ;;  %vm4335_vm6 = vcmask 17408  }
  0x1f   :  { %4635 = vmatpush3.msra.mxu0 %v78_v4  ;;  %v64_v19 = vmul.f32 -1e+09, %v62_v16  ;;  %s5074_s22 = smov 48   ;;  %s5075_s24 = smov 72  }
  0x20   :  { %4637 = vmatmul.mubr.msk.f32.vlgmr.msra.gmra.mxu0 %vm89_vm0, %v5189_v5  ;;  %4649 = vmatprep.subr.mxu0 %v5065_v6  ;;  %v5234_v28 = vrot.slane %v65_v23, %v70_v20  ;;  %s5787_s25 = smov 104   ;;  %s5785_s30 = smov 40  }
  0x21   :  { %4651 = vmatprep.mubr.msk.f32.mxu0 %vm5066_vm1, %v5065_v6  ;;  %v5231_v22 = vrot.slane %v64_v19, %v70_v20  ;;  %s5792_s20 = sld [smem:[#allocation9_spill]] }
  0xe0   :  { %v4638_v7 = vpop.f32.mrf.mxu0 }
  0xe1   :  { %v5206_v11 = vadd.f32 %v4638_v7, %v4362_v8 }
  0xe2   :  { %v162_v9 = vpop.f32.mrf.mxu0 }
  0xe3   :  { %v5202_v10 = vadd.f32 %v4362_v8, %v162_v9 }
  0xe5   :  { %183 = vrot.lane.b32.xlu0 %v5202_v10, %s5067_s23 }
  0xe9   :  { %261 = vrot.lane.b32.xlu0 %v5206_v11, %s5067_s23 }
 0x157   :  { %v184_v12 = vpop.permute.xlu0 %183 }
 0x158   :  { %4640 = vmatpush3.xpose.msk.msra.mxu1 %vm185_vm2, %v184_v12 }
 0x159   :  { %4644 = vmatprep.subr.mxu1 %v5065_v6 }
 0x15b   :  { %4642 = vmatmul.mubr.msk.f32.vlgmr.msra.gmra.mxu1 %vm185_vm2, %v5202_v10  ;;  %v262_v13 = vpop.permute.xlu0 %261 }
 0x15c   :  { %4645 = vmatpush3.xpose.msk.msra.mxu1 %vm185_vm2, %v262_v13  ;;  %4646 = vmatprep.mubr.msk.f32.mxu1 %vm5066_vm1, %v5065_v6 }
 0x15d   :  { %4654 = vmatprep.subr.mxu1 %v5065_v6 }
 0x15f   :  { %4647 = vmatmul.mubr.msk.f32.vlgmr.msra.gmra.mxu1 %vm185_vm2, %v5206_v11 }
 0x160   :  { %4656 = vmatprep.mubr.msk.f32.mxu1 %vm5066_vm1, %v5065_v6 }
 0x21b   :  { %v256_v24 = vpop.f32.mrf.mxu1 }
 0x21c   :  { %v337_v25 = vmul.f32 0.35355338, %v256_v24 }
 0x21d   :  { %v4643_v26 = vpop.f32.mrf.mxu1 }
 0x21e   :  { %v339_v27 = vadd.f32 %v337_v25, %v5231_v22 }
 0x21f   :  { %v333_v29 = vpop.f32.mrf.mxu1 }
 0x220   :  { %v338_v30 = vmul.f32 0.35355338, %v333_v29  ;;  %v341_v31 = vsel %vm185_vm2, %v339_v27, -inf }
 0x221   :  { %342 = vmax.xlane.f32.xlu1 %v341_v31  ;;  %v4648_v32 = vpop.f32.mrf.mxu1 }
 0x222   :  { %v340_v33 = vadd.f32 %v338_v30, %v5234_v28 }
 0x224   :  { %v344_v34 = vsel %vm185_vm2, %v340_v33, -inf }
 0x225   :  { %345 = vmax.xlane.f32.xlu1 %v344_v34 }
 0x236   :  { %363 = vrot.lane.b32.xlu1 %v5202_v10, %s5068_s2 }
 0x2aa   :  { %v343_v35 = vpop.xlane.xlu1 %342 }
 0x2ab   :  { %v347_v36 = vsub.f32 %v339_v27, %v343_v35 }
 0x2ad   :  { %v349_v37 = vmul.f32 1.442695, %v347_v36 }
 0x2ae   :  { %v346_v38 = vpop.xlane.xlu1 %345 }
 0x2af   :  { %4936 = vpow2.f32 %v349_v37  ;;  %v348_v39 = vsub.f32 %v340_v33, %v346_v38  ;;  %v172_v38 = vld [vmem:[%s5772_s5 + $0x8] sm:$0xff] }
 0x2b1   :  { %v351_v40 = vmul.f32 1.442695, %v348_v39 }
 0x2b2   :  { %v364_v41 = vpop.permute.xlu1 %363 }
 0x2b3   :  { %4938 = vpow2.f32 %v351_v40  ;;  %4650 = vmatpush3.msra.mxu0 %v364_v41 }
 0x2b4   :  { %4659 = vmatprep.subr.mxu0 %v171_v55 }
 0x2bc   :  { %v4937_v42 = vpop.eup %4936 }
 0x2bd   :  { %v353_v43 = vsel %vm185_vm2, %v4937_v42, 0.0 }
 0x2be   :  { %354 = vadd.xlane.f32.xlu0 %v353_v43 }
 0x2c0   :  { %v4939_v44 = vpop.eup %4938 }
 0x2c1   :  { %v356_v45 = vsel %vm185_vm2, %v4939_v44, 0.0 }
 0x2c2   :  { %357 = vadd.xlane.f32.xlu1 %v356_v45 }
 0x2d3   :  { %439 = vrot.lane.b32.xlu1 %v5206_v11, %s5068_s2 }
 0x2d4   :  { %598 = vrot.lane.b32.xlu0 %v5202_v10, %s5069_s28 }
 0x2d7   :  { %600 = vrot.lane.b32.xlu1 %v5202_v10, %s5070_s29 }
 0x2db   :  { %678 = vrot.lane.b32.xlu1 %v5206_v11, %s5070_s29 }
 0x2df   :  { %676 = vrot.lane.b32.xlu1 %v5206_v11, %s5069_s28 }
 0x347   :  { %v355_v46 = vpop.xlane.xlu0 %354 }
 0x348   :  { %4940 = vrcp.f32 %v355_v46 }
 0x34b   :  { %v358_v47 = vpop.xlane.xlu1 %357  ;;  %v599_v54 = vpop.permute.xlu0 %598 }
 0x34c   :  { %4942 = vrcp.f32 %v358_v47 }
 0x34f   :  { %v440_v48 = vpop.permute.xlu1 %439 }
 0x350   :  { %4655 = vmatpush3.msra.mxu1 %v440_v48 }
 0x351   :  { %4664 = vmatprep.subr.mxu1 %v5065_v6 }
 0x353   :  { %v601_v53 = vpop.permute.xlu1 %600 }
 0x355   :  { %v4941_v49 = vpop.eup %4940 }
 0x356   :  { %v361_v50 = vmul.f32 %v4941_v49, %v4937_v42 }
 0x357   :  { %v679_v57 = vpop.permute.xlu1 %678 }
 0x358   :  { %4652 = vmatmul.mubr.msk.f32.vlgmr.msra.gmra.mxu0 %vm185_vm2, %v361_v50 }
 0x359   :  { %v4943_v51 = vpop.eup %4942  ;;  %4660 = vmatpush3.msra.mxu0 %v171_v55  ;;  %v4365_v55 = vld [vmem:[%s5773_s6] ss:$0 sm:$0xff] }
 0x35a   :  { %v362_v52 = vmul.f32 %v4943_v51, %v4939_v44  ;;  %4669 = vmatprep.subr.mxu0 %v5065_v6 }
 0x35b   :  { %v677_v61 = vpop.permute.xlu1 %676 }
 0x35c   :  { %4657 = vmatmul.mubr.msk.f32.vlgmr.msra.gmra.mxu1 %vm185_vm2, %v362_v52 }
 0x35d   :  { %4665 = vmatpush3.xpose.msk.msra.mxu1 %vm185_vm2, %v601_v53  ;;  %4666 = vmatprep.mubr.msk.f32.mxu1 %vm5066_vm1, %v5065_v6 }
 0x35e   :  { %4674 = vmatprep.subr.mxu1 %v5065_v6 }
 0x360   :  { %4667 = vmatmul.mubr.msk.f32.vlgmr.msra.gmra.mxu1 %vm185_vm2, %v599_v54 }
 0x361   :  { %4676 = vmatprep.mubr.msk.f32.mxu1 %vm5066_vm1, %v5065_v6 }
 0x418   :  { %v435_v56 = vpop.f32.mrf.mxu0 }
 0x419   :  { %4661 = vmatprep.mubr.msk.f32.mxu0 %vm185_vm2, %v435_v56 }
 0x41a   :  { %v4653_v58 = vpop.f32.mrf.mxu0 }
 0x41c   :  { %v511_v59 = vpop.f32.mrf.mxu1 }
 0x41d   :  { %4662 = vmatmul.mubr.msk.f32.vlgmr.msra.gmra.mxu0 %vm185_vm2, %v511_v59 }
 0x41e   :  { %4670 = vmatpush3.xpose.msk.msra.mxu0 %vm185_vm2, %v679_v57  ;;  %v4658_v60 = vpop.f32.mrf.mxu1  ;;  %4671 = vmatprep.mubr.msk.f32.mxu0 %vm5066_vm1, %v5065_v6 }
 0x41f   :  { %4679 = vmatprep.subr.mxu0 %v5065_v6 }
 0x420   :  { %v672_v62 = vpop.f32.mrf.mxu1 }
 0x421   :  { %v754_v63 = vmul.f32 0.35355338, %v672_v62  ;;  %4672 = vmatmul.mubr.msk.f32.vlgmr.msra.gmra.mxu0 %vm185_vm2, %v677_v61 }
 0x422   :  { %v4668_v0 = vpop.f32.mrf.mxu1  ;;  %4681 = vmatprep.mubr.msk.f32.mxu0 %vm5066_vm1, %v5065_v6 }
 0x423   :  { %v756_v1 = vadd.f32 %v754_v63, %v5231_v22 }
 0x425   :  { %v758_v3 = vsel %vm185_vm2, %v756_v1, -inf }
 0x426   :  { %759 = vmax.xlane.f32.xlu1 %v758_v3 }
 0x4af   :  { %v760_v4 = vpop.xlane.xlu1 %759 }
 0x4b0   :  { %v764_v7 = vsub.f32 %v756_v1, %v760_v4 }
 0x4b2   :  { %v766_v8 = vmul.f32 1.442695, %v764_v7 }
 0x4b4   :  { %4944 = vpow2.f32 %v766_v8 }
 0x4c1   :  { %v4945_v9 = vpop.eup %4944 }
 0x4c2   :  { %v770_v12 = vsel %vm185_vm2, %v4945_v9, 0.0 }
 0x4c3   :  { %771 = vadd.xlane.f32.xlu1 %v770_v12 }
 0x4dd   :  { %v5279_v13 = vpop.f32.mrf.mxu0 }
 0x4de   :  { %v597_v56 = vadd.f32 %v5279_v13, %v4365_v55 }
 0x4df   :  { %v5281_v14 = vpop.f32.mrf.mxu0 }
 0x4e0   :  { %v596_v58 = vadd.f32 %v4365_v55, %v5281_v14 }
 0x4e1   :  { %v750_v15 = vpop.f32.mrf.mxu0 }
 0x4e2   :  { %v755_v16 = vmul.f32 0.35355338, %v750_v15 }
 0x4e3   :  { %v4673_v18 = vpop.f32.mrf.mxu0 }
 0x4e4   :  { %v757_v19 = vadd.f32 %v755_v16, %v5234_v28  ;;  %v173_v18 = vld [vmem:[%s5772_s5 + $0x10] sm:$0xff] }
 0x4e6   :  { %v761_v20 = vsel %vm185_vm2, %v757_v19, -inf }
 0x4e7   :  { %762 = vmax.xlane.f32.xlu0 %v761_v20 }
 0x4fd   :  { %856 = vrot.lane.b32.xlu0 %v5206_v11, %s5071_s10 }
 0x501   :  { %1015 = vrot.lane.b32.xlu0 %v5202_v10, %s5072_s17 }
 0x54c   :  { %v772_v29 = vpop.xlane.xlu1 %771 }
 0x570   :  { %v763_v21 = vpop.xlane.xlu0 %762 }
 0x571   :  { %v765_v23 = vsub.f32 %v757_v19, %v763_v21 }
 0x573   :  { %v768_v24 = vmul.f32 1.442695, %v765_v23 }
 0x574   :  { %v857_v25 = vpop.permute.xlu0 %856 }
 0x575   :  { %4946 = vpow2.f32 %v768_v24  ;;  %4680 = vmatpush3.msra.mxu0 %v857_v25 }
 0x576   :  { %4689 = vmatprep.subr.mxu0 %v5065_v6  ;;  %4948 = vrcp.f32 %v772_v29 }
 0x578   :  { %v1016_v37 = vpop.permute.xlu0 %1015 }
 0x582   :  { %v4947_v26 = vpop.eup %4946 }
 0x583   :  { %v773_v27 = vsel %vm185_vm2, %v4947_v26, 0.0  ;;  %v4949_v31 = vpop.eup %4948 }
 0x584   :  { %774 = vadd.xlane.f32.xlu1 %v773_v27  ;;  %v778_v33 = vmul.f32 %v4949_v31, %v4945_v9 }
 0x595   :  { %780 = vrot.lane.b32.xlu1 %v5202_v10, %s5071_s10 }
 0x599   :  { %1017 = vrot.lane.b32.xlu1 %v5202_v10, %s5073_s18 }
 0x59d   :  { %1095 = vrot.lane.b32.xlu1 %v5206_v11, %s5073_s18 }
 0x5a1   :  { %1093 = vrot.lane.b32.xlu1 %v5206_v11, %s5072_s17 }
 0x60d   :  { %v775_v30 = vpop.xlane.xlu1 %774 }
 0x60e   :  { %4950 = vrcp.f32 %v775_v30 }
 0x611   :  { %v781_v32 = vpop.permute.xlu1 %780 }
 0x612   :  { %4675 = vmatpush3.msra.mxu1 %v781_v32 }
 0x613   :  { %4677 = vmatmul.mubr.msk.f32.vlgmr.msra.gmra.mxu1 %vm185_vm2, %v778_v33  ;;  %4684 = vmatprep.subr.mxu1 %v172_v38 }
 0x614   :  { %4685 = vmatpush3.msra.mxu1 %v172_v38 }
 0x615   :  { %v1018_v36 = vpop.permute.xlu1 %1017  ;;  %4694 = vmatprep.subr.mxu1 %v5065_v6 }
 0x619   :  { %v1096_v41 = vpop.permute.xlu1 %1095 }
 0x61b   :  { %v4951_v34 = vpop.eup %4950 }
 0x61c   :  { %v779_v35 = vmul.f32 %v4951_v34, %v4947_v26 }
 0x61d   :  { %v1094_v44 = vpop.permute.xlu1 %1093 }
 0x61e   :  { %4682 = vmatmul.mubr.msk.f32.vlgmr.msra.gmra.mxu0 %vm185_vm2, %v779_v35 }
 0x61f   :  { %4690 = vmatpush3.xpose.msk.msra.mxu0 %vm185_vm2, %v1018_v36  ;;  %4691 = vmatprep.mubr.msk.f32.mxu0 %vm5066_vm1, %v5065_v6 }
 0x620   :  { %4699 = vmatprep.subr.mxu0 %v5065_v6 }
 0x622   :  { %4692 = vmatmul.mubr.msk.f32.vlgmr.msra.gmra.mxu0 %vm185_vm2, %v1016_v37 }
 0x623   :  { %4701 = vmatprep.mubr.msk.f32.mxu0 %vm5066_vm1, %v5065_v6 }
 0x6d3   :  { %v852_v39 = vpop.f32.mrf.mxu1 }
 0x6d4   :  { %4686 = vmatprep.mubr.msk.f32.mxu1 %vm185_vm2, %v852_v39 }
 0x6d5   :  { %v4678_v40 = vpop.f32.mrf.mxu1 }
 0x6de   :  { %v928_v42 = vpop.f32.mrf.mxu0 }
 0x6df   :  { %4687 = vmatmul.mubr.msk.f32.vlgmr.msra.gmra.mxu1 %vm185_vm2, %v928_v42 }
 0x6e0   :  { %4695 = vmatpush3.xpose.msk.msra.mxu1 %vm185_vm2, %v1096_v41  ;;  %v4683_v43 = vpop.f32.mrf.mxu0  ;;  %4696 = vmatprep.mubr.msk.f32.mxu1 %vm5066_vm1, %v5065_v6 }
 0x6e1   :  { %4704 = vmatprep.subr.mxu1 %v5065_v6 }
 0x6e2   :  { %v1089_v45 = vpop.f32.mrf.mxu0 }
 0x6e3   :  { %v1171_v46 = vmul.f32 0.35355338, %v1089_v45  ;;  %4697 = vmatmul.mubr.msk.f32.vlgmr.msra.gmra.mxu1 %vm185_vm2, %v1094_v44 }
 0x6e4   :  { %v4693_v47 = vpop.f32.mrf.mxu0  ;;  %4706 = vmatprep.mubr.msk.f32.mxu1 %vm5066_vm1, %v5065_v6 }
 0x6e5   :  { %v1173_v48 = vadd.f32 %v1171_v46, %v5231_v22 }
 0x6e7   :  { %v1175_v49 = vsel %vm185_vm2, %v1173_v48, -inf }
 0x6e8   :  { %1176 = vmax.xlane.f32.xlu0 %v1175_v49 }
 0x771   :  { %v1177_v50 = vpop.xlane.xlu0 %1176 }
 0x772   :  { %v1181_v51 = vsub.f32 %v1173_v48, %v1177_v50 }
 0x774   :  { %v1183_v52 = vmul.f32 1.442695, %v1181_v51 }
 0x776   :  { %4952 = vpow2.f32 %v1183_v52 }
 0x783   :  { %v4953_v53 = vpop.eup %4952 }
 0x784   :  { %v1187_v54 = vsel %vm185_vm2, %v4953_v53, 0.0 }
 0x785   :  { %1188 = vadd.xlane.f32.xlu0 %v1187_v54 }
 0x79f   :  { %v4688_v57 = vpop.f32.mrf.mxu1 }
 0x7a0   :  { %v5329_v59 = vadd.f32 %v4688_v57, %v597_v56 }
 0x7a1   :  { %v1004_v60 = vpop.f32.mrf.mxu1 }
 0x7a2   :  { %v5331_v61 = vadd.f32 %v1004_v60, %v596_v58 }
 0x7a3   :  { %v1167_v62 = vpop.f32.mrf.mxu1 }
 0x7a4   :  { %v1172_v63 = vmul.f32 0.35355338, %v1167_v62 }
 0x7a5   :  { %v4698_v0 = vpop.f32.mrf.mxu1 }
 0x7a6   :  { %v1174_v1 = vadd.f32 %v1172_v63, %v5234_v28 }
 0x7a8   :  { %v1178_v3 = vsel %vm185_vm2, %v1174_v1, -inf }
 0x7a9   :  { %1179 = vmax.xlane.f32.xlu1 %v1178_v3 }
 0x7ba   :  { %1197 = vrot.lane.b32.xlu1 %v5202_v10, %s5074_s22 }
 0x7be   :  { %1434 = vrot.lane.b32.xlu1 %v5202_v10, %s5075_s24 }
 0x7c2   :  { %1512 = vrot.lane.b32.xlu1 %v5206_v11, %s5075_s24 }
 0x7c6   :  { %1510 = vrot.lane.b32.xlu1 %v5206_v11, %s5787_s25 }
 0x80e   :  { %v1189_v4 = vpop.xlane.xlu0 %1188 }
 0x80f   :  { %4954 = vrcp.f32 %v1189_v4 }
 0x81c   :  { %v4955_v8 = vpop.eup %4954 }
 0x81d   :  { %v1195_v14 = vmul.f32 %v4955_v8, %v4953_v53 }
 0x832   :  { %v1180_v7 = vpop.xlane.xlu1 %1179 }
 0x833   :  { %v1182_v9 = vsub.f32 %v1174_v1, %v1180_v7 }
 0x835   :  { %v1185_v12 = vmul.f32 1.442695, %v1182_v9 }
 0x836   :  { %v1198_v13 = vpop.permute.xlu1 %1197 }
 0x837   :  { %4956 = vpow2.f32 %v1185_v12  ;;  %4700 = vmatpush3.msra.mxu0 %v1198_v13 }
 0x838   :  { %4702 = vmatmul.mubr.msk.f32.vlgmr.msra.gmra.mxu0 %vm185_vm2, %v1195_v14  ;;  %4709 = vmatprep.subr.mxu0 %v173_v18 }
 0x839   :  { %4710 = vmatpush3.msra.mxu0 %v173_v18 }
 0x83a   :  { %4719 = vmatprep.subr.mxu0 %v5065_v6  ;;  %v1435_v24 = vpop.permute.xlu1 %1434 }
 0x83e   :  { %v1513_v29 = vpop.permute.xlu1 %1512 }
 0x842   :  { %v1511_v32 = vpop.permute.xlu1 %1510 }
 0x844   :  { %v4957_v15 = vpop.eup %4956 }
 0x845   :  { %v1190_v16 = vsel %vm185_vm2, %v4957_v15, 0.0 }
 0x846   :  { %1191 = vadd.xlane.f32.xlu0 %v1190_v16 }
 0x85c   :  { %1273 = vrot.lane.b32.xlu0 %v5206_v11, %s5074_s22 }
 0x860   :  { %1432 = vrot.lane.b32.xlu0 %v5202_v10, %s5787_s25 }
 0x8cf   :  { %v1192_v19 = vpop.xlane.xlu0 %1191 }
 0x8d0   :  { %4958 = vrcp.f32 %v1192_v19 }
 0x8d3   :  { %v1274_v20 = vpop.permute.xlu0 %1273 }
 0x8d4   :  { %4705 = vmatpush3.msra.mxu1 %v1274_v20 }
 0x8d5   :  { %4714 = vmatprep.subr.mxu1 %v5065_v6 }
 0x8d7   :  { %v1433_v25 = vpop.permute.xlu0 %1432 }
 0x8dd   :  { %v4959_v21 = vpop.eup %4958 }
 0x8de   :  { %v1196_v23 = vmul.f32 %v4959_v21, %v4957_v15 }
 0x8e0   :  { %4707 = vmatmul.mubr.msk.f32.vlgmr.msra.gmra.mxu1 %vm185_vm2, %v1196_v23 }
 0x8e1   :  { %4715 = vmatpush3.xpose.msk.msra.mxu1 %vm185_vm2, %v1435_v24  ;;  %4716 = vmatprep.mubr.msk.f32.mxu1 %vm5066_vm1, %v5065_v6 }
 0x8e2   :  { %4724 = vmatprep.subr.mxu1 %v5065_v6 }
 0x8e4   :  { %4717 = vmatmul.mubr.msk.f32.vlgmr.msra.gmra.mxu1 %vm185_vm2, %v1433_v25 }
 0x8e5   :  { %4726 = vmatprep.mubr.msk.f32.mxu1 %vm5066_vm1, %v5065_v6 }
 0x8f8   :  { %v1269_v26 = vpop.f32.mrf.mxu0 }
 0x8f9   :  { %4711 = vmatprep.mubr.msk.f32.mxu0 %vm185_vm2, %v1269_v26 }
 0x8fa   :  { %v4703_v27 = vpop.f32.mrf.mxu0 }
 0x9a0   :  { %v1345_v30 = vpop.f32.mrf.mxu1 }
 0x9a1   :  { %4712 = vmatmul.mubr.msk.f32.vlgmr.msra.gmra.mxu0 %vm185_vm2, %v1345_v30  ;;  %v1897_v30 = vld [vmem:[%s5774_s7 + $0x8] sm:$0xff] }
 0x9a2   :  { %4720 = vmatpush3.xpose.msk.msra.mxu0 %vm185_vm2, %v1513_v29  ;;  %v4708_v31 = vpop.f32.mrf.mxu1  ;;  %4721 = vmatprep.mubr.msk.f32.mxu0 %vm5066_vm1, %v5065_v6  ;;  %v1898_v29 = vld [vmem:[%s5774_s7 + $0x10] sm:$0xff] }
 0x9a3   :  { %4729 = vmatprep.subr.mxu0 %v5065_v6  ;;  %v1896_v31 = vld [vmem:[%s5774_s7] sm:$0xff] }
 0x9a4   :  { %v1506_v33 = vpop.f32.mrf.mxu1 }
 0x9a5   :  { %v1588_v34 = vmul.f32 0.35355338, %v1506_v33  ;;  %4722 = vmatmul.mubr.msk.f32.vlgmr.msra.gmra.mxu0 %vm185_vm2, %v1511_v32 }
 0x9a6   :  { %v4718_v35 = vpop.f32.mrf.mxu1  ;;  %4731 = vmatprep.mubr.msk.f32.mxu0 %vm5066_vm1, %v5065_v6 }
 0x9a7   :  { %v1590_v36 = vadd.f32 %v1588_v34, %v5231_v22 }
 0x9a9   :  { %v1592_v37 = vsel %vm185_vm2, %v1590_v36, -inf }
 0x9aa   :  { %1593 = vmax.xlane.f32.xlu0 %v1592_v37 }
 0xa33   :  { %v1594_v38 = vpop.xlane.xlu0 %1593 }
 0xa34   :  { %v1598_v39 = vsub.f32 %v1590_v36, %v1594_v38 }
 0xa36   :  { %v1600_v40 = vmul.f32 1.442695, %v1598_v39  ;;  %v4398_v39 = vld [vmem:[%s5778_s11] ss:$0 sm:$0xff] }
 0xa38   :  { %4960 = vpow2.f32 %v1600_v40 }
 0xa45   :  { %v4961_v41 = vpop.eup %4960 }
 0xa46   :  { %v1604_v42 = vsel %vm185_vm2, %v4961_v41, 0.0 }
 0xa47   :  { %1605 = vadd.xlane.f32.xlu0 %v1604_v42 }
 0xa61   :  { %v4713_v43 = vpop.f32.mrf.mxu0 }
 0xa62   :  { %v1431_v44 = vadd.f32 %v4713_v43, %v5329_v59 }
 0xa63   :  { %v1421_v45 = vpop.f32.mrf.mxu0 }
 0xa64   :  { %v1430_v46 = vadd.f32 %v1421_v45, %v5331_v61 }
 0xa65   :  { %v1584_v47 = vpop.f32.mrf.mxu0 }
 0xa66   :  { %v1589_v48 = vmul.f32 0.35355338, %v1584_v47 }
 0xa67   :  { %v4723_v49 = vpop.f32.mrf.mxu0 }
 0xa68   :  { %v1591_v50 = vadd.f32 %v1589_v48, %v5234_v28  ;;  %v2013_v48 = vld [vmem:[%s5776_s9 + $0x38] sm:$0xff]  ;;  %v2012_v49 = vld [vmem:[%s5776_s9 + $0x30] sm:$0xff] }
 0xa6a   :  { %v1595_v51 = vsel %vm185_vm2, %v1591_v50, -inf }
 0xa6b   :  { %1596 = vmax.xlane.f32.xlu1 %v1595_v51  ;;  %v2010_v51 = vld [vmem:[%s5776_s9 + $0x20] sm:$0xff] }
 0xa7c   :  { %1614 = vrot.lane.b32.xlu1 %v5202_v10, %s5785_s30  ;;  %v174_v10 = vld [vmem:[%s5772_s5 + $0x18] sm:$0xff] }
 0xad0   :  { %v1606_v52 = vpop.xlane.xlu0 %1605 }
 0xad1   :  { %4962 = vrcp.f32 %v1606_v52  ;;  %v2009_v52 = vld [vmem:[%s5776_s9 + $0x18] sm:$0xff] }
 0xade   :  { %v4963_v54 = vpop.eup %4962 }
 0xadf   :  { %v1612_v58 = vmul.f32 %v4963_v54, %v4961_v41  ;;  %v2007_v54 = vld [vmem:[%s5776_s9 + $0x8] sm:$0xff] }
 0xaf4   :  { %v1597_v53 = vpop.xlane.xlu1 %1596 }
 0xaf5   :  { %v1599_v55 = vsub.f32 %v1591_v50, %v1597_v53  ;;  %v2011_v50 = vld [vmem:[%s5776_s9 + $0x28] sm:$0xff]  ;;  %v2008_v53 = vld [vmem:[%s5776_s9 + $0x10] sm:$0xff] }
 0xaf7   :  { %v1602_v56 = vmul.f32 1.442695, %v1599_v55  ;;  %v2006_v55 = vld [vmem:[%s5776_s9] sm:$0xff] }
 0xaf8   :  { %v1615_v57 = vpop.permute.xlu1 %1614 }
 0xaf9   :  { %4964 = vpow2.f32 %v1602_v56  ;;  %4725 = vmatpush3.msra.mxu1 %v1615_v57  ;;  %v4400_v56 = vld [vmem:[%s5775_s8] ss:$0 sm:$0xff] }
 0xafa   :  { %4727 = vmatmul.mubr.msk.f32.vlgmr.msra.gmra.mxu1 %vm185_vm2, %v1612_v58  ;;  %4734 = vmatprep.subr.mxu1 %v174_v10 }
 0xafb   :  { %4735 = vmatpush3.msra.mxu1 %v174_v10 }
 0xafc   :  { %4750 = vmatprep.subr.mxu1 %v2013_v48 }
 0xb06   :  { %v4965_v59 = vpop.eup %4964 }
 0xb07   :  { %v1607_v60 = vsel %vm185_vm2, %v4965_v59, 0.0 }
 0xb08   :  { %1608 = vadd.xlane.f32.xlu0 %v1607_v60 }
 0xb1e   :  { %1690 = vrot.lane.b32.xlu0 %v5206_v11, %s5785_s30 }
 0xb91   :  { %v1609_v61 = vpop.xlane.xlu0 %1608 }
 0xb92   :  { %4966 = vrcp.f32 %v1609_v61 }
 0xb95   :  { %v1691_v62 = vpop.permute.xlu0 %1690 }
 0xb96   :  { %4730 = vmatpush3.msra.mxu0 %v1691_v62 }
 0xb9f   :  { %v4967_v63 = vpop.eup %4966 }
 0xba0   :  { %v1613_v0 = vmul.f32 %v4967_v63, %v4965_v59 }
 0xba2   :  { %4732 = vmatmul.mubr.msk.f32.vlgmr.msra.gmra.mxu0 %vm185_vm2, %v1613_v0 }
 0xbba   :  { %v1686_v1 = vpop.f32.mrf.mxu1 }
 0xbbb   :  { %4736 = vmatprep.mubr.msk.f32.mxu1 %vm185_vm2, %v1686_v1 }
 0xbbc   :  { %v4728_v3 = vpop.f32.mrf.mxu1 }
 0xc62   :  { %v1762_v4 = vpop.f32.mrf.mxu0 }
 0xc63   :  { %4737 = vmatmul.mubr.msk.f32.vlgmr.msra.gmra.mxu1 %vm185_vm2, %v1762_v4 }
 0xc64   :  { %v4733_v11 = vpop.f32.mrf.mxu0  ;;  %4751 = vmatpush3.msra.mxu1 %v2013_v48 }
 0xc65   :  { %4752 = vmatprep.subr.mxu1 %v2012_v49 }
 0xc66   :  { %4753 = vmatpush3.msra.mxu1 %v2012_v49  ;;  %v4406_v49 = vld [vmem:[%s5780_s13] ss:$0 sm:$0xff] }
 0xc67   :  { %4754 = vmatprep.subr.mxu1 %v2011_v50 }
 0xc68   :  { %4755 = vmatpush3.msra.mxu1 %v2011_v50 }
 0xc69   :  { %4756 = vmatprep.subr.mxu1 %v2010_v51 }
 0xc6a   :  { %4757 = vmatpush3.msra.mxu1 %v2010_v51 }
 0xc6b   :  { %4758 = vmatprep.subr.mxu1 %v2009_v52 }
 0xc6c   :  { %4759 = vmatpush3.msra.mxu1 %v2009_v52 }
 0xc6d   :  { %4760 = vmatprep.subr.mxu1 %v2008_v53 }
 0xc6e   :  { %4761 = vmatpush3.msra.mxu1 %v2008_v53 }
 0xc6f   :  { %4762 = vmatprep.subr.mxu1 %v2007_v54 }
 0xc70   :  { %4763 = vmatpush3.msra.mxu1 %v2007_v54  ;;  %v4407_v54 = vld [vmem:[%s5781_s14] ss:$0 sm:$0xff] }
 0xc71   :  { %4764 = vmatprep.subr.mxu1 %v2006_v55 }
 0xc72   :  { %4765 = vmatpush3.msra.mxu1 %v2006_v55 }
 0xc73   :  { %4785 = vmatprep.subr.mxu1 %v5065_v6 }
 0xd23   :  { %v4738_v7 = vpop.f32.mrf.mxu1 }
 0xd24   :  { %v1848_v8 = vadd.f32 %v4738_v7, %v1431_v44  ;;  %v4399_v44 = vld [vmem:[%s5779_s12] ss:$0 sm:$0xff] }
 0xd25   :  { %v1838_v9 = vpop.f32.mrf.mxu1 }
 0xd26   :  { %v1847_v12 = vadd.f32 %v1838_v9, %v1430_v46  ;;  %v1850_v13 = vadd.f32 %v1848_v8, %v5189_v5 }
 0xd28   :  { %v1856_v14 = vsel %vm89_vm0, %v1850_v13, 0.0  ;;  %v1849_v15 = vadd.f32 %v1847_v12, %v5176_v2  ;;  %v1899_v2 = vld [vmem:[%s5774_s7 + $0x18] sm:$0xff] }
 0xd29   :  { %1857 = vadd.xlane.f32.xlu0 %v1856_v14  ;;  %4739 = vmatprep.subr.mxu0 %v1899_v2 }
 0xd2a   :  { %v1853_v16 = vsel %vm89_vm0, %v1849_v15, 0.0  ;;  %4740 = vmatpush3.msra.mxu0 %v1899_v2 }
 0xd2b   :  { %1854 = vadd.xlane.f32.xlu1 %v1853_v16  ;;  %4741 = vmatprep.subr.mxu0 %v1898_v29 }
 0xd2c   :  { %4742 = vmatpush3.msra.mxu0 %v1898_v29 }
 0xd2d   :  { %4743 = vmatprep.subr.mxu0 %v1897_v30 }
 0xd2e   :  { %4744 = vmatpush3.msra.mxu0 %v1897_v30 }
 0xd2f   :  { %4745 = vmatprep.subr.mxu0 %v1896_v31 }
 0xd30   :  { %4746 = vmatpush3.msra.mxu0 %v1896_v31 }
 0xdb2   :  { %v1858_v18 = vpop.xlane.xlu0 %1857 }
 0xdb3   :  { %v1861_v19 = vmul.f32 0.03125, %v1858_v18 }
 0xdb4   :  { %v1855_v20 = vpop.xlane.xlu1 %1854 }
 0xdb5   :  { %v1863_v21 = vsub.f32 %v1850_v13, %v1861_v19  ;;  %v1860_v23 = vmul.f32 0.03125, %v1855_v20  ;;  %v4403_v19 = vld [vmem:[%s5792_s20] ss:$0 sm:$0xff] }
 0xdb7   :  { %v1862_v24 = vsub.f32 %v1849_v15, %v1860_v23  ;;  %v1865_v25 = vmul.f32 %v1863_v21, %v1863_v21 }
 0xdb9   :  { %v1869_v26 = vsel %vm89_vm0, %v1865_v25, 0.0  ;;  %v1864_v27 = vmul.f32 %v1862_v24, %v1862_v24 }
 0xdba   :  { %1870 = vadd.xlane.f32.xlu0 %v1869_v26 }
 0xdbb   :  { %v1866_v5 = vsel %vm89_vm0, %v1864_v27, 0.0 }
 0xdbc   :  { %1867 = vadd.xlane.f32.xlu1 %v1866_v5 }
 0xe43   :  { %v1871_v32 = vpop.xlane.xlu0 %1870 }
 0xe44   :  { %v1873_v33 = vmul.f32 0.03125, %v1871_v32 }
 0xe45   :  { %v1868_v34 = vpop.xlane.xlu1 %1867 }
 0xe46   :  { %v1875_v35 = vadd.f32 1e-05, %v1873_v33  ;;  %v1872_v36 = vmul.f32 0.03125, %v1868_v34 }
 0xe48   :  { %4968 = vrsqrt.f32 %v1875_v35  ;;  %v1874_v37 = vadd.f32 1e-05, %v1872_v36 }
 0xe4a   :  { %4970 = vrsqrt.f32 %v1874_v37 }
 0xe55   :  { %v4969_v38 = vpop.eup %4968 }
 0xe56   :  { %v1879_v40 = vmul.f32 %v4969_v38, %v1863_v21  ;;  %v4411_v38 = vld [vmem:[%s5770_s3 + $0x38] sm:$0xff] }
 0xe57   :  { %v4971_v41 = vpop.eup %4970  ;;  %4769 = vmatprep.subr.mxu0 %v4411_v38 }
 0xe58   :  { %v1878_v42 = vmul.f32 %v4971_v41, %v1862_v24  ;;  %v1887_v43 = vmul.f32 %v4398_v39, %v1879_v40  ;;  %v4409_v40 = vld [vmem:[%s5770_s3 + $0x28] sm:$0xff]  ;;  %v4408_v41 = vld [vmem:[%s5770_s3 + $0x20] sm:$0xff] }
 0xe5a   :  { %v1886_v45 = vmul.f32 %v4398_v39, %v1878_v42  ;;  %v1895_v47 = vadd.f32 %v4399_v44, %v1887_v43  ;;  %v4410_v39 = vld [vmem:[%s5770_s3 + $0x30] sm:$0xff] }
 0xe5c   :  { %v5414_v46 = vadd.f32 %v4399_v44, %v1886_v45 }
 0xe5e   :  { %4747 = vmatprep.mubr.msk.f32.mxu0 %vm89_vm0, %v5414_v46 }
 0xe5f   :  { %4748 = vmatmul.mubr.msk.f32.vlgmr.msra.gmra.mxu0 %vm89_vm0, %v1895_v47 }
 0xe60   :  { %4770 = vmatpush3.msra.mxu0 %v4411_v38 }
 0xe61   :  { %4771 = vmatprep.subr.mxu0 %v4410_v39 }
 0xe62   :  { %4772 = vmatpush3.msra.mxu0 %v4410_v39 }
 0xe63   :  { %4773 = vmatprep.subr.mxu0 %v4409_v40 }
 0xe64   :  { %4774 = vmatpush3.msra.mxu0 %v4409_v40 }
 0xe65   :  { %4775 = vmatprep.subr.mxu0 %v4408_v41 }
 0xe66   :  { %4776 = vmatpush3.msra.mxu0 %v4408_v41 }
 0xe67   :  { %4780 = vmatprep.subr.mxu0 %v5065_v6 }
 0xf1f   :  { %v4749_v57 = vpop.f32.mrf.mxu0 }
 0xf20   :  { %v1985_v58 = vadd.f32 %v4749_v57, %v4400_v56 }
 0xf21   :  { %v1979_v59 = vpop.f32.mrf.mxu0 }
 0xf22   :  { %v1989_v60 = vmul.f32 %v1985_v58, %v1985_v58  ;;  %v1980_v10 = vadd.f32 %v4400_v56, %v1979_v59 }
 0xf24   :  { %v1991_v61 = vmul.f32 %v1989_v60, %v1985_v58  ;;  %v1988_v62 = vmul.f32 %v1980_v10, %v1980_v10 }
 0xf26   :  { %v1993_v63 = vmul.f32 0.044715, %v1991_v61  ;;  %v1990_v0 = vmul.f32 %v1988_v62, %v1980_v10 }
 0xf28   :  { %v1995_v1 = vadd.f32 %v1993_v63, %v1985_v58  ;;  %v1992_v3 = vmul.f32 0.044715, %v1990_v0 }
 0xf2a   :  { %v1997_v4 = vmul.f32 0.7978846, %v1995_v1  ;;  %v1994_v11 = vadd.f32 %v1992_v3, %v1980_v10 }
 0xf2c   :  { %4972 = vtanh.f32 %v1997_v4  ;;  %v1996_v7 = vmul.f32 0.7978846, %v1994_v11 }
 0xf2e   :  { %4974 = vtanh.f32 %v1996_v7 }
 0xf39   :  { %v4973_v8 = vpop.eup %4972 }
 0xf3a   :  { %v2001_v9 = vadd.f32 1.0, %v4973_v8 }
 0xf3b   :  { %v4975_v12 = vpop.eup %4974 }
 0xf3c   :  { %v2000_v13 = vadd.f32 1.0, %v4975_v12  ;;  %v2003_v14 = vmul.f32 0.5, %v2001_v9 }
 0xf3e   :  { %v2002_v15 = vmul.f32 0.5, %v2000_v13  ;;  %v2005_v18 = vmul.f32 %v2003_v14, %v1985_v58  ;;  %v4413_v58 = vld [vmem:[%s5771_s4 + $0x1] ss:$0 sm:$0xff] }
 0xf40   :  { %v2004_v16 = vmul.f32 %v2002_v15, %v1980_v10 }
 0xf42   :  { %4766 = vmatprep.mubr.msk.f32.mxu1 %vm2021_vm3, %v2004_v16 }
 0xf43   :  { %4767 = vmatmul.mubr.msk.f32.vlgmr.msra.gmra.mxu1 %vm2021_vm3, %v2005_v18 }
 0xf44   :  { %4787 = vmatprep.mubr.msk.f32.mxu1 %vm5066_vm1, %v5065_v6 }
0x1003   :  { %v4768_v20 = vpop.f32.mrf.mxu1 }
0x1004   :  { %v2100_v21 = vadd.f32 %v4768_v20, %v4403_v19 }
0x1005   :  { %v2094_v23 = vpop.f32.mrf.mxu1 }
0x1006   :  { %v2095_v24 = vadd.f32 %v4403_v19, %v2094_v23  ;;  %v2104_v25 = vadd.f32 %v2100_v21, %v1895_v47 }
0x1008   :  { %v2110_v26 = vsel %vm89_vm0, %v2104_v25, 0.0  ;;  %v2103_v27 = vadd.f32 %v2095_v24, %v5414_v46 }
0x1009   :  { %2111 = vadd.xlane.f32.xlu0 %v2110_v26 }
0x100a   :  { %v2107_v5 = vsel %vm89_vm0, %v2103_v27, 0.0 }
0x100b   :  { %2108 = vadd.xlane.f32.xlu1 %v2107_v5 }
0x1092   :  { %v2112_v2 = vpop.xlane.xlu0 %2111 }
0x1093   :  { %v2114_v29 = vmul.f32 0.03125, %v2112_v2 }
0x1094   :  { %v2109_v30 = vpop.xlane.xlu1 %2108 }
0x1095   :  { %v2116_v31 = vsub.f32 %v2104_v25, %v2114_v29  ;;  %v2113_v32 = vmul.f32 0.03125, %v2109_v30 }
0x1097   :  { %v2115_v33 = vsub.f32 %v2103_v27, %v2113_v32  ;;  %v2118_v34 = vmul.f32 %v2116_v31, %v2116_v31 }
0x1099   :  { %v2122_v35 = vsel %vm89_vm0, %v2118_v34, 0.0  ;;  %v2117_v36 = vmul.f32 %v2115_v33, %v2115_v33 }
0x109a   :  { %2123 = vadd.xlane.f32.xlu0 %v2122_v35  ;;  %v4416_v35 = vld [vmem:[%s5772_s5 + $0x20] sm:$0xff] }
0x109b   :  { %v2119_v37 = vsel %vm89_vm0, %v2117_v36, 0.0 }
0x109c   :  { %2120 = vadd.xlane.f32.xlu1 %v2119_v37 }
0x1123   :  { %v2124_v42 = vpop.xlane.xlu0 %2123 }
0x1124   :  { %v2126_v43 = vmul.f32 0.03125, %v2124_v42 }
0x1125   :  { %v2121_v44 = vpop.xlane.xlu1 %2120 }
0x1126   :  { %v2128_v45 = vadd.f32 1e-05, %v2126_v43  ;;  %v2125_v46 = vmul.f32 0.03125, %v2121_v44 }
0x1128   :  { %4976 = vrsqrt.f32 %v2128_v45  ;;  %v2127_v47 = vadd.f32 1e-05, %v2125_v46 }
0x112a   :  { %4978 = vrsqrt.f32 %v2127_v47 }
0x1135   :  { %v4977_v48 = vpop.eup %4976 }
0x1136   :  { %v2132_v50 = vmul.f32 %v4977_v48, %v2116_v31 }
0x1137   :  { %v4979_v51 = vpop.eup %4978 }
0x1138   :  { %v2131_v52 = vmul.f32 %v4979_v51, %v2115_v33  ;;  %v2140_v53 = vmul.f32 %v4406_v49, %v2132_v50 }
0x113a   :  { %v2139_v55 = vmul.f32 %v4406_v49, %v2131_v52  ;;  %v5480_v57 = vadd.f32 %v4407_v54, %v2140_v53 }
0x113c   :  { %v5478_v56 = vadd.f32 %v4407_v54, %v2139_v55 }
0x113e   :  { %4777 = vmatprep.mubr.msk.f32.mxu0 %vm89_vm0, %v5478_v56 }
0x113f   :  { %4778 = vmatmul.mubr.msk.f32.vlgmr.msra.gmra.mxu0 %vm89_vm0, %v5480_v57 }
0x1140   :  { %4782 = vmatprep.mubr.msk.f32.mxu0 %vm5066_vm1, %v5065_v6 }
0x11ff   :  { %v4779_v59 = vpop.f32.mrf.mxu0 }
0x1200   :  { %v5491_v60 = vadd.f32 %v4779_v59, %v4413_v58 }
0x1201   :  { %v2234_v10 = vpop.f32.mrf.mxu0 }
0x1202   :  { %v5493_v61 = vadd.f32 %v4413_v58, %v2234_v10  ;;  %2334 = vrot.lane.b32.xlu0 %v5491_v60, %s5067_s23 }
0x1204   :  { %2257 = vrot.lane.b32.xlu1 %v5493_v61, %s5067_s23 }
0x1274   :  { %v2335_v62 = vpop.permute.xlu0 %2334 }
0x1275   :  { %4786 = vmatpush3.xpose.msk.msra.mxu1 %vm185_vm2, %v2335_v62 }
0x1276   :  { %v2258_v63 = vpop.permute.xlu1 %2257  ;;  %4795 = vmatprep.subr.mxu1 %v5065_v6 }
0x1277   :  { %4781 = vmatpush3.xpose.msk.msra.mxu0 %vm185_vm2, %v2258_v63 }
0x1278   :  { %4788 = vmatmul.mubr.msk.f32.vlgmr.msra.gmra.mxu1 %vm185_vm2, %v5491_v60  ;;  %4790 = vmatprep.subr.mxu0 %v5065_v6 }
0x1279   :  { %4797 = vmatprep.mubr.msk.f32.mxu1 %vm5066_vm1, %v5065_v6 }
0x127a   :  { %4783 = vmatmul.mubr.msk.f32.vlgmr.msra.gmra.mxu0 %vm185_vm2, %v5493_v61 }
0x127b   :  { %4792 = vmatprep.mubr.msk.f32.mxu0 %vm5066_vm1, %v5065_v6 }
0x1338   :  { %v2406_v0 = vpop.f32.mrf.mxu1 }
0x1339   :  { %v2411_v1 = vmul.f32 0.35355338, %v2406_v0 }
0x133a   :  { %v2329_v3 = vpop.f32.mrf.mxu0  ;;  %v4789_v4 = vpop.f32.mrf.mxu1 }
0x133b   :  { %v2410_v11 = vmul.f32 0.35355338, %v2329_v3  ;;  %v2413_v7 = vadd.f32 %v2411_v1, %v5234_v28 }
0x133c   :  { %v4784_v8 = vpop.f32.mrf.mxu0 }
0x133d   :  { %v2417_v9 = vsel %vm185_vm2, %v2413_v7, -inf  ;;  %v2412_v12 = vadd.f32 %v2410_v11, %v5231_v22 }
0x133e   :  { %2418 = vmax.xlane.f32.xlu0 %v2417_v9  ;;  %v4417_v9 = vld [vmem:[%s5772_s5 + $0x28] sm:$0xff] }
0x133f   :  { %v2414_v13 = vsel %vm185_vm2, %v2412_v12, -inf }
0x1340   :  { %2415 = vmax.xlane.f32.xlu1 %v2414_v13 }
0x13c7   :  { %v2419_v14 = vpop.xlane.xlu0 %2418 }
0x13c8   :  { %v2421_v15 = vsub.f32 %v2413_v7, %v2419_v14 }
0x13c9   :  { %v2416_v16 = vpop.xlane.xlu1 %2415 }
0x13ca   :  { %v2424_v18 = vmul.f32 1.442695, %v2421_v15  ;;  %v2420_v19 = vsub.f32 %v2412_v12, %v2416_v16 }
0x13cc   :  { %4980 = vpow2.f32 %v2424_v18  ;;  %v2422_v20 = vmul.f32 1.442695, %v2420_v19 }
0x13ce   :  { %4982 = vpow2.f32 %v2422_v20 }
0x13d9   :  { %v4981_v21 = vpop.eup %4980 }
0x13da   :  { %v2429_v23 = vsel %vm185_vm2, %v4981_v21, 0.0 }
0x13db   :  { %v4983_v24 = vpop.eup %4982  ;;  %2430 = vadd.xlane.f32.xlu0 %v2429_v23 }
0x13dc   :  { %v2426_v25 = vsel %vm185_vm2, %v4983_v24, 0.0 }
0x13dd   :  { %2427 = vadd.xlane.f32.xlu1 %v2426_v25 }
0x13ee   :  { %2436 = vrot.lane.b32.xlu1 %v5493_v61, %s5068_s2 }
0x13f1   :  { %2512 = vrot.lane.b32.xlu0 %v5491_v60, %s5068_s2  ;;  %s4228_s2 = sld [smem:[#allocation3]] }
0x13f2   :  { %2673 = vrot.lane.b32.xlu1 %v5493_v61, %s5070_s29 }
0x13f5   :  { %2671 = vrot.lane.b32.xlu0 %v5493_v61, %s5069_s28 }
0x13f6   :  { %2751 = vrot.lane.b32.xlu1 %v5491_v60, %s5070_s29 }
0x13f7   :  { %p4229_p5 = scmp.gt.s32.totalorder %s4228_s2, 0  ;;  %p4482_p6 = scmp.lt.s32.totalorder %s4228_s2, 7 }
0x13fa   :  { %2749 = vrot.lane.b32.xlu1 %v5491_v60, %s5069_s28  ;;  %s4230_s28 = scalar_select %p4229_p5, %s4228_s2, 0 }
0x13fc   :  { %s5796_s28 = smov (!%p4482_p6, %s4230_s28), 7 }
0x1464   :  { %v2431_v26 = vpop.xlane.xlu0 %2430 }
0x1465   :  { %4984 = vrcp.f32 %v2431_v26 }
0x1466   :  { %v2428_v27 = vpop.xlane.xlu1 %2427 }
0x1467   :  { %4986 = vrcp.f32 %v2428_v27 }
0x1468   :  { %v2513_v5 = vpop.permute.xlu0 %2512 }
0x1469   :  { %4796 = vmatpush3.msra.mxu1 %v2513_v5 }
0x146a   :  { %v2437_v2 = vpop.permute.xlu1 %2436  ;;  %4805 = vmatprep.subr.mxu1 %v5065_v6 }
0x146b   :  { %4791 = vmatpush3.msra.mxu0 %v2437_v2 }
0x146c   :  { %v2672_v34 = vpop.permute.xlu0 %2671  ;;  %4800 = vmatprep.subr.mxu0 %v4416_v35 }
0x146e   :  { %v2674_v32 = vpop.permute.xlu1 %2673 }
0x1472   :  { %v4985_v29 = vpop.eup %4984  ;;  %v2752_v37 = vpop.permute.xlu1 %2751 }
0x1473   :  { %v2435_v30 = vmul.f32 %v4985_v29, %v4981_v21 }
0x1474   :  { %v4987_v31 = vpop.eup %4986 }
0x1475   :  { %4798 = vmatmul.mubr.msk.f32.vlgmr.msra.gmra.mxu1 %vm185_vm2, %v2435_v30  ;;  %v2434_v33 = vmul.f32 %v4987_v31, %v4983_v24 }
0x1476   :  { %4806 = vmatpush3.xpose.msk.msra.mxu1 %vm185_vm2, %v2674_v32  ;;  %4807 = vmatprep.mubr.msk.f32.mxu1 %vm5066_vm1, %v5065_v6  ;;  %v2750_v44 = vpop.permute.xlu1 %2749 }
0x1477   :  { %4793 = vmatmul.mubr.msk.f32.vlgmr.msra.gmra.mxu0 %vm185_vm2, %v2434_v33  ;;  %4815 = vmatprep.subr.mxu1 %v5065_v6 }
0x1478   :  { %4801 = vmatpush3.msra.mxu0 %v4416_v35  ;;  %v4421_v35 = vld [vmem:[%s5773_s6 + $0x1] ss:$0 sm:$0xff]  ;;  %s5793_s6 = smov 104  }
0x1479   :  { %4808 = vmatmul.mubr.msk.f32.vlgmr.msra.gmra.mxu1 %vm185_vm2, %v2672_v34  ;;  %4810 = vmatprep.subr.mxu0 %v5065_v6 }
0x147a   :  { %4817 = vmatprep.mubr.msk.f32.mxu1 %vm5066_vm1, %v5065_v6 }
0x1535   :  { %v2584_v36 = vpop.f32.mrf.mxu1 }
0x1537   :  { %v2508_v38 = vpop.f32.mrf.mxu0  ;;  %v4799_v39 = vpop.f32.mrf.mxu1 }
0x1538   :  { %4802 = vmatprep.mubr.msk.f32.mxu0 %vm185_vm2, %v2508_v38 }
0x1539   :  { %v4794_v40 = vpop.f32.mrf.mxu0  ;;  %4803 = vmatmul.mubr.msk.f32.vlgmr.msra.gmra.mxu0 %vm185_vm2, %v2584_v36  ;;  %v2745_v41 = vpop.f32.mrf.mxu1 }
0x153a   :  { %v2827_v42 = vmul.f32 0.35355338, %v2745_v41  ;;  %4811 = vmatpush3.xpose.msk.msra.mxu0 %vm185_vm2, %v2752_v37  ;;  %4812 = vmatprep.mubr.msk.f32.mxu0 %vm5066_vm1, %v5065_v6 }
0x153b   :  { %v4809_v43 = vpop.f32.mrf.mxu1  ;;  %4820 = vmatprep.subr.mxu0 %v5065_v6 }
0x153c   :  { %v2829_v45 = vadd.f32 %v2827_v42, %v5231_v22 }
0x153d   :  { %4813 = vmatmul.mubr.msk.f32.vlgmr.msra.gmra.mxu0 %vm185_vm2, %v2750_v44 }
0x153e   :  { %v2831_v46 = vsel %vm185_vm2, %v2829_v45, -inf  ;;  %4822 = vmatprep.mubr.msk.f32.mxu0 %vm5066_vm1, %v5065_v6 }
0x153f   :  { %2832 = vmax.xlane.f32.xlu0 %v2831_v46 }
0x15c8   :  { %v2833_v47 = vpop.xlane.xlu0 %2832 }
0x15c9   :  { %v2837_v48 = vsub.f32 %v2829_v45, %v2833_v47 }
0x15cb   :  { %v2839_v49 = vmul.f32 1.442695, %v2837_v48 }
0x15cd   :  { %4988 = vpow2.f32 %v2839_v49 }
0x15da   :  { %v4989_v50 = vpop.eup %4988 }
0x15db   :  { %v2843_v51 = vsel %vm185_vm2, %v4989_v50, 0.0 }
0x15dc   :  { %2844 = vadd.xlane.f32.xlu0 %v2843_v51 }
0x15f9   :  { %v5555_v52 = vpop.f32.mrf.mxu0 }
0x15fa   :  { %v2670_v36 = vadd.f32 %v5555_v52, %v4421_v35 }
0x15fb   :  { %v5557_v53 = vpop.f32.mrf.mxu0 }
0x15fc   :  { %v2669_v38 = vadd.f32 %v4421_v35, %v5557_v53 }
0x15fd   :  { %v2823_v54 = vpop.f32.mrf.mxu0 }
0x15fe   :  { %v2828_v55 = vmul.f32 0.35355338, %v2823_v54 }
0x15ff   :  { %v4814_v58 = vpop.f32.mrf.mxu0 }
0x1600   :  { %v2830_v59 = vadd.f32 %v2828_v55, %v5234_v28  ;;  %v4418_v58 = vld [vmem:[%s5772_s5 + $0x30] sm:$0xff] }
0x1602   :  { %v2834_v10 = vsel %vm185_vm2, %v2830_v59, -inf }
0x1603   :  { %2835 = vmax.xlane.f32.xlu1 %v2834_v10 }
0x1614   :  { %2853 = vrot.lane.b32.xlu1 %v5493_v61, %s5071_s10 }
0x1618   :  { %3090 = vrot.lane.b32.xlu1 %v5493_v61, %s5073_s18 }
0x161c   :  { %3168 = vrot.lane.b32.xlu1 %v5491_v60, %s5073_s18 }
0x1620   :  { %3166 = vrot.lane.b32.xlu1 %v5491_v60, %s5072_s17 }
0x1665   :  { %v2845_v62 = vpop.xlane.xlu0 %2844 }
0x1666   :  { %4990 = vrcp.f32 %v2845_v62 }
0x1673   :  { %v4991_v0 = vpop.eup %4990 }
0x1674   :  { %v2851_v11 = vmul.f32 %v4991_v0, %v4989_v50 }
0x168c   :  { %v2836_v63 = vpop.xlane.xlu1 %2835 }
0x168d   :  { %v2838_v1 = vsub.f32 %v2830_v59, %v2836_v63 }
0x168f   :  { %v2841_v3 = vmul.f32 1.442695, %v2838_v1 }
0x1690   :  { %v2854_v4 = vpop.permute.xlu1 %2853 }
0x1691   :  { %4992 = vpow2.f32 %v2841_v3  ;;  %4816 = vmatpush3.msra.mxu1 %v2854_v4 }
0x1692   :  { %4818 = vmatmul.mubr.msk.f32.vlgmr.msra.gmra.mxu1 %vm185_vm2, %v2851_v11  ;;  %4825 = vmatprep.subr.mxu1 %v4417_v9 }
0x1693   :  { %4826 = vmatpush3.msra.mxu1 %v4417_v9 }
0x1694   :  { %4835 = vmatprep.subr.mxu1 %v5065_v6  ;;  %v3091_v16 = vpop.permute.xlu1 %3090 }
0x1698   :  { %v3169_v21 = vpop.permute.xlu1 %3168 }
0x169c   :  { %v3167_v25 = vpop.permute.xlu1 %3166 }
0x169e   :  { %v4993_v7 = vpop.eup %4992 }
0x169f   :  { %v2846_v8 = vsel %vm185_vm2, %v4993_v7, 0.0 }
0x16a0   :  { %2847 = vadd.xlane.f32.xlu0 %v2846_v8 }
0x16b6   :  { %2929 = vrot.lane.b32.xlu0 %v5491_v60, %s5071_s10 }
0x16ba   :  { %3088 = vrot.lane.b32.xlu0 %v5493_v61, %s5072_s17 }
0x1729   :  { %v2848_v12 = vpop.xlane.xlu0 %2847 }
0x172a   :  { %4994 = vrcp.f32 %v2848_v12 }
0x172d   :  { %v2930_v13 = vpop.permute.xlu0 %2929 }
0x172e   :  { %4821 = vmatpush3.msra.mxu0 %v2930_v13 }
0x172f   :  { %4830 = vmatprep.subr.mxu0 %v5065_v6 }
0x1731   :  { %v3089_v18 = vpop.permute.xlu0 %3088 }
0x1737   :  { %v4995_v14 = vpop.eup %4994 }
0x1738   :  { %v2852_v15 = vmul.f32 %v4995_v14, %v4993_v7 }
0x173a   :  { %4823 = vmatmul.mubr.msk.f32.vlgmr.msra.gmra.mxu0 %vm185_vm2, %v2852_v15 }
0x173b   :  { %4831 = vmatpush3.xpose.msk.msra.mxu0 %vm185_vm2, %v3091_v16  ;;  %4832 = vmatprep.mubr.msk.f32.mxu0 %vm5066_vm1, %v5065_v6 }
0x173c   :  { %4840 = vmatprep.subr.mxu0 %v5065_v6 }
0x173e   :  { %4833 = vmatmul.mubr.msk.f32.vlgmr.msra.gmra.mxu0 %vm185_vm2, %v3089_v18 }
0x173f   :  { %4842 = vmatprep.mubr.msk.f32.mxu0 %vm5066_vm1, %v5065_v6 }
0x1752   :  { %v2925_v19 = vpop.f32.mrf.mxu1 }
0x1753   :  { %4827 = vmatprep.mubr.msk.f32.mxu1 %vm185_vm2, %v2925_v19 }
0x1754   :  { %v4819_v20 = vpop.f32.mrf.mxu1 }
0x17fa   :  { %v3001_v23 = vpop.f32.mrf.mxu0 }
0x17fb   :  { %4828 = vmatmul.mubr.msk.f32.vlgmr.msra.gmra.mxu1 %vm185_vm2, %v3001_v23 }
0x17fc   :  { %4836 = vmatpush3.xpose.msk.msra.mxu1 %vm185_vm2, %v3169_v21  ;;  %v4824_v24 = vpop.f32.mrf.mxu0  ;;  %4837 = vmatprep.mubr.msk.f32.mxu1 %vm5066_vm1, %v5065_v6 }
0x17fd   :  { %4845 = vmatprep.subr.mxu1 %v5065_v6 }
0x17fe   :  { %v3162_v26 = vpop.f32.mrf.mxu0 }
0x17ff   :  { %v3244_v27 = vmul.f32 0.35355338, %v3162_v26  ;;  %4838 = vmatmul.mubr.msk.f32.vlgmr.msra.gmra.mxu1 %vm185_vm2, %v3167_v25 }
0x1800   :  { %v4834_v5 = vpop.f32.mrf.mxu0  ;;  %4847 = vmatprep.mubr.msk.f32.mxu1 %vm5066_vm1, %v5065_v6 }
0x1801   :  { %v3246_v2 = vadd.f32 %v3244_v27, %v5231_v22 }
0x1803   :  { %v3248_v29 = vsel %vm185_vm2, %v3246_v2, -inf }
0x1804   :  { %3249 = vmax.xlane.f32.xlu0 %v3248_v29 }
0x188d   :  { %v3250_v30 = vpop.xlane.xlu0 %3249 }
0x188e   :  { %v3254_v31 = vsub.f32 %v3246_v2, %v3250_v30 }
0x1890   :  { %v3256_v32 = vmul.f32 1.442695, %v3254_v31 }
0x1892   :  { %4996 = vpow2.f32 %v3256_v32 }
0x189f   :  { %v4997_v33 = vpop.eup %4996 }
0x18a0   :  { %v3260_v34 = vsel %vm185_vm2, %v4997_v33, 0.0 }
0x18a1   :  { %3261 = vadd.xlane.f32.xlu0 %v3260_v34 }
0x18bb   :  { %v4829_v37 = vpop.f32.mrf.mxu1 }
0x18bc   :  { %v5605_v39 = vadd.f32 %v4829_v37, %v2670_v36 }
0x18bd   :  { %v3077_v40 = vpop.f32.mrf.mxu1 }
0x18be   :  { %v5607_v41 = vadd.f32 %v3077_v40, %v2669_v38 }
0x18bf   :  { %v3240_v42 = vpop.f32.mrf.mxu1 }
0x18c0   :  { %v3245_v43 = vmul.f32 0.35355338, %v3240_v42 }
0x18c1   :  { %v4839_v44 = vpop.f32.mrf.mxu1 }
0x18c2   :  { %v3247_v45 = vadd.f32 %v3245_v43, %v5234_v28 }
0x18c4   :  { %v3251_v46 = vsel %vm185_vm2, %v3247_v45, -inf }
0x18c5   :  { %3252 = vmax.xlane.f32.xlu1 %v3251_v46 }
0x18d6   :  { %3270 = vrot.lane.b32.xlu1 %v5493_v61, %s5074_s22 }
0x18da   :  { %3507 = vrot.lane.b32.xlu1 %v5493_v61, %s5075_s24 }
0x18de   :  { %3585 = vrot.lane.b32.xlu1 %v5491_v60, %s5075_s24 }
0x18e2   :  { %3583 = vrot.lane.b32.xlu1 %v5491_v60, %s5793_s6 }
0x192a   :  { %v3262_v47 = vpop.xlane.xlu0 %3261 }
0x192b   :  { %4998 = vrcp.f32 %v3262_v47 }
0x1938   :  { %v4999_v49 = vpop.eup %4998 }
0x1939   :  { %v3268_v53 = vmul.f32 %v4999_v49, %v4997_v33 }
0x194e   :  { %v3253_v48 = vpop.xlane.xlu1 %3252 }
0x194f   :  { %v3255_v50 = vsub.f32 %v3247_v45, %v3253_v48 }
0x1951   :  { %v3258_v51 = vmul.f32 1.442695, %v3255_v50 }
0x1952   :  { %v3271_v52 = vpop.permute.xlu1 %3270 }
0x1953   :  { %5000 = vpow2.f32 %v3258_v51  ;;  %4841 = vmatpush3.msra.mxu0 %v3271_v52 }
0x1954   :  { %4843 = vmatmul.mubr.msk.f32.vlgmr.msra.gmra.mxu0 %vm185_vm2, %v3268_v53  ;;  %4850 = vmatprep.subr.mxu0 %v4418_v58 }
0x1955   :  { %4851 = vmatpush3.msra.mxu0 %v4418_v58 }
0x1956   :  { %4860 = vmatprep.subr.mxu0 %v5065_v6  ;;  %v3508_v0 = vpop.permute.xlu1 %3507 }
0x195a   :  { %v3586_v11 = vpop.permute.xlu1 %3585 }
0x195e   :  { %v3584_v9 = vpop.permute.xlu1 %3583 }
0x1960   :  { %v5001_v54 = vpop.eup %5000 }
0x1961   :  { %v3263_v55 = vsel %vm185_vm2, %v5001_v54, 0.0 }
0x1962   :  { %3264 = vadd.xlane.f32.xlu0 %v3263_v55 }
0x1978   :  { %3346 = vrot.lane.b32.xlu0 %v5491_v60, %s5074_s22  ;;  %s5794_s22 = smov 40  }
0x197c   :  { %3505 = vrot.lane.b32.xlu0 %v5493_v61, %s5793_s6 }
0x19eb   :  { %v3265_v59 = vpop.xlane.xlu0 %3264 }
0x19ec   :  { %5002 = vrcp.f32 %v3265_v59 }
0x19ef   :  { %v3347_v10 = vpop.permute.xlu0 %3346 }
0x19f0   :  { %4846 = vmatpush3.msra.mxu1 %v3347_v10 }
0x19f1   :  { %4855 = vmatprep.subr.mxu1 %v5065_v6 }
0x19f3   :  { %v3506_v1 = vpop.permute.xlu0 %3505 }
0x19f9   :  { %v5003_v62 = vpop.eup %5002 }
0x19fa   :  { %v3269_v63 = vmul.f32 %v5003_v62, %v5001_v54 }
0x19fc   :  { %4848 = vmatmul.mubr.msk.f32.vlgmr.msra.gmra.mxu1 %vm185_vm2, %v3269_v63 }
0x19fd   :  { %4856 = vmatpush3.xpose.msk.msra.mxu1 %vm185_vm2, %v3508_v0  ;;  %4857 = vmatprep.mubr.msk.f32.mxu1 %vm5066_vm1, %v5065_v6 }
0x19fe   :  { %4865 = vmatprep.subr.mxu1 %v5065_v6 }
0x1a00   :  { %4858 = vmatmul.mubr.msk.f32.vlgmr.msra.gmra.mxu1 %vm185_vm2, %v3506_v1 }
0x1a01   :  { %4867 = vmatprep.mubr.msk.f32.mxu1 %vm5066_vm1, %v5065_v6 }
0x1a14   :  { %v3342_v3 = vpop.f32.mrf.mxu0 }
0x1a15   :  { %4852 = vmatprep.mubr.msk.f32.mxu0 %vm185_vm2, %v3342_v3  ;;  %v4460_v3 = vld [vmem:[%s5774_s7 + $0x30] sm:$0xff] }
0x1a16   :  { %v4844_v4 = vpop.f32.mrf.mxu0 }
0x1a17   :  { %v4459_v4 = vld [vmem:[%s5774_s7 + $0x28] sm:$0xff] }
0x1abc   :  { %v3418_v7 = vpop.f32.mrf.mxu1 }
0x1abd   :  { %4853 = vmatmul.mubr.msk.f32.vlgmr.msra.gmra.mxu0 %vm185_vm2, %v3418_v7 }
0x1abe   :  { %4861 = vmatpush3.xpose.msk.msra.mxu0 %vm185_vm2, %v3586_v11  ;;  %v4849_v8 = vpop.f32.mrf.mxu1  ;;  %4862 = vmatprep.mubr.msk.f32.mxu0 %vm5066_vm1, %v5065_v6  ;;  %v4458_v11 = vld [vmem:[%s5774_s7 + $0x20] sm:$0xff] }
0x1abf   :  { %4870 = vmatprep.subr.mxu0 %v5065_v6 }
0x1ac0   :  { %v3579_v12 = vpop.f32.mrf.mxu1 }
0x1ac1   :  { %v3661_v13 = vmul.f32 0.35355338, %v3579_v12  ;;  %4863 = vmatmul.mubr.msk.f32.vlgmr.msra.gmra.mxu0 %vm185_vm2, %v3584_v9 }
0x1ac2   :  { %v4859_v14 = vpop.f32.mrf.mxu1  ;;  %4872 = vmatprep.mubr.msk.f32.mxu0 %vm5066_vm1, %v5065_v6 }
0x1ac3   :  { %v3663_v15 = vadd.f32 %v3661_v13, %v5231_v22 }
0x1ac5   :  { %v3665_v16 = vsel %vm185_vm2, %v3663_v15, -inf }
0x1ac6   :  { %3666 = vmax.xlane.f32.xlu0 %v3665_v16  ;;  %v4456_v16 = vld [vmem:[%s5778_s11 + $0x1] ss:$0 sm:$0xff] }
0x1b4f   :  { %v3667_v18 = vpop.xlane.xlu0 %3666 }
0x1b50   :  { %v3671_v19 = vsub.f32 %v3663_v15, %v3667_v18 }
0x1b52   :  { %v3673_v20 = vmul.f32 1.442695, %v3671_v19 }
0x1b54   :  { %5004 = vpow2.f32 %v3673_v20 }
0x1b61   :  { %v5005_v21 = vpop.eup %5004 }
0x1b62   :  { %v3677_v23 = vsel %vm185_vm2, %v5005_v21, 0.0 }
0x1b63   :  { %3678 = vadd.xlane.f32.xlu0 %v3677_v23  ;;  %v4457_v23 = vld [vmem:[%s5779_s12 + $0x1] ss:$0 sm:$0xff] }
0x1b7d   :  { %v4854_v24 = vpop.f32.mrf.mxu0 }
0x1b7e   :  { %v3504_v25 = vadd.f32 %v4854_v24, %v5605_v39 }
0x1b7f   :  { %v3494_v26 = vpop.f32.mrf.mxu0 }
0x1b80   :  { %v3503_v27 = vadd.f32 %v3494_v26, %v5607_v41 }
0x1b81   :  { %v3657_v5 = vpop.f32.mrf.mxu0 }
0x1b82   :  { %v3662_v2 = vmul.f32 0.35355338, %v3657_v5  ;;  %v4472_v5 = vld [vmem:[%s5776_s9 + $0x70] sm:$0xff] }
0x1b83   :  { %v4864_v22 = vpop.f32.mrf.mxu0 }
0x1b84   :  { %v3664_v29 = vadd.f32 %v3662_v2, %v5234_v28  ;;  %v4471_v2 = vld [vmem:[%s5776_s9 + $0x68] sm:$0xff]  ;;  %v4470_v22 = vld [vmem:[%s5776_s9 + $0x60] sm:$0xff] }
0x1b86   :  { %v3668_v30 = vsel %vm185_vm2, %v3664_v29, -inf }
0x1b87   :  { %3669 = vmax.xlane.f32.xlu1 %v3668_v30  ;;  %v4468_v30 = vld [vmem:[%s5776_s9 + $0x50] sm:$0xff] }
0x1b98   :  { %3687 = vrot.lane.b32.xlu1 %v5493_v61, %s5794_s22  ;;  %v4419_v61 = vld [vmem:[%s5772_s5 + $0x38] sm:$0xff] }
0x1bec   :  { %v3679_v31 = vpop.xlane.xlu0 %3678 }
0x1bed   :  { %5006 = vrcp.f32 %v3679_v31  ;;  %v4467_v31 = vld [vmem:[%s5776_s9 + $0x48] sm:$0xff] }
0x1bfa   :  { %v5007_v33 = vpop.eup %5006 }
0x1bfb   :  { %v3685_v37 = vmul.f32 %v5007_v33, %v5005_v21  ;;  %v4463_v33 = vld [vmem:[%s5775_s8 + $0x1] ss:$0 sm:$0xff] }
0x1c10   :  { %v3670_v32 = vpop.xlane.xlu1 %3669 }
0x1c11   :  { %v3672_v34 = vsub.f32 %v3664_v29, %v3670_v32  ;;  %v4469_v29 = vld [vmem:[%s5776_s9 + $0x58] sm:$0xff]  ;;  %v4466_v32 = vld [vmem:[%s5776_s9 + $0x40] sm:$0xff] }
0x1c13   :  { %v3675_v35 = vmul.f32 1.442695, %v3672_v34 }
0x1c14   :  { %v3688_v36 = vpop.permute.xlu1 %3687 }
0x1c15   :  { %5008 = vpow2.f32 %v3675_v35  ;;  %4866 = vmatpush3.msra.mxu1 %v3688_v36 }
0x1c16   :  { %4868 = vmatmul.mubr.msk.f32.vlgmr.msra.gmra.mxu1 %vm185_vm2, %v3685_v37  ;;  %4875 = vmatprep.subr.mxu1 %v4419_v61 }
0x1c17   :  { %4876 = vmatpush3.msra.mxu1 %v4419_v61 }
0x1c22   :  { %v5009_v38 = vpop.eup %5008 }
0x1c23   :  { %v3680_v28 = vsel %vm185_vm2, %v5009_v38, 0.0 }
0x1c24   :  { %3681 = vadd.xlane.f32.xlu0 %v3680_v28 }
0x1c3a   :  { %3763 = vrot.lane.b32.xlu0 %v5491_v60, %s5794_s22 }
0x1cad   :  { %v3682_v39 = vpop.xlane.xlu0 %3681 }
0x1cae   :  { %5010 = vrcp.f32 %v3682_v39 }
0x1cb1   :  { %v3764_v40 = vpop.permute.xlu0 %3763 }
0x1cb2   :  { %4871 = vmatpush3.msra.mxu0 %v3764_v40 }
0x1cbb   :  { %v5011_v41 = vpop.eup %5010 }
0x1cbc   :  { %v3686_v42 = vmul.f32 %v5011_v41, %v5009_v38 }
0x1cbe   :  { %4873 = vmatmul.mubr.msk.f32.vlgmr.msra.gmra.mxu0 %vm185_vm2, %v3686_v42 }
0x1cd6   :  { %v3759_v43 = vpop.f32.mrf.mxu1 }
0x1cd7   :  { %4877 = vmatprep.mubr.msk.f32.mxu1 %vm185_vm2, %v3759_v43 }
0x1cd8   :  { %v4869_v44 = vpop.f32.mrf.mxu1 }
0x1d7e   :  { %v3835_v45 = vpop.f32.mrf.mxu0 }
0x1d7f   :  { %4878 = vmatmul.mubr.msk.f32.vlgmr.msra.gmra.mxu1 %vm185_vm2, %v3835_v45 }
0x1d80   :  { %v4874_v60 = vpop.f32.mrf.mxu0 }
0x1e3f   :  { %v4879_v46 = vpop.f32.mrf.mxu1 }
0x1e40   :  { %v3921_v47 = vadd.f32 %v4879_v46, %v3504_v25 }
0x1e41   :  { %v3911_v48 = vpop.f32.mrf.mxu1 }
0x1e42   :  { %v3920_v49 = vadd.f32 %v3911_v48, %v3503_v27  ;;  %v3923_v50 = vadd.f32 %v3921_v47, %v5480_v57  ;;  %v4473_v27 = vld [vmem:[%s5776_s9 + $0x78] sm:$0xff] }
0x1e43   :  { %4891 = vmatprep.subr.mxu1 %v4473_v27 }
0x1e44   :  { %v3931_v51 = vsel %vm89_vm0, %v3923_v50, 0.0  ;;  %v3922_v52 = vadd.f32 %v3920_v49, %v5478_v56  ;;  %v4461_v56 = vld [vmem:[%s5774_s7 + $0x38] sm:$0xff]  ;;  %4892 = vmatpush3.msra.mxu1 %v4473_v27  ;;  %v4480_v27 = vld [vmem:[%s5780_s13 + $0x1] ss:$0 sm:$0xff]  ;;  %s5078_s13 = smov [#allocation4]  }
0x1e45   :  { %3932 = vadd.xlane.f32.xlu0 %v3931_v51  ;;  %4880 = vmatprep.subr.mxu0 %v4461_v56 }
0x1e46   :  { %v3928_v53 = vsel %vm89_vm0, %v3922_v52, 0.0  ;;  %4881 = vmatpush3.msra.mxu0 %v4461_v56  ;;  %4893 = vmatprep.subr.mxu1 %v4472_v5 }
0x1e47   :  { %3929 = vadd.xlane.f32.xlu1 %v3928_v53  ;;  %4882 = vmatprep.subr.mxu0 %v4460_v3  ;;  %v4475_v53 = vld [vmem:[%s5792_s20 + $0x1] ss:$0 sm:$0xff] }
0x1e48   :  { %4883 = vmatpush3.msra.mxu0 %v4460_v3  ;;  %4894 = vmatpush3.msra.mxu1 %v4472_v5 }
0x1e49   :  { %4884 = vmatprep.subr.mxu0 %v4459_v4  ;;  %4895 = vmatprep.subr.mxu1 %v4471_v2 }
0x1e4a   :  { %4885 = vmatpush3.msra.mxu0 %v4459_v4  ;;  %4896 = vmatpush3.msra.mxu1 %v4471_v2 }
0x1e4b   :  { %4886 = vmatprep.subr.mxu0 %v4458_v11  ;;  %4897 = vmatprep.subr.mxu1 %v4470_v22 }
0x1e4c   :  { %4887 = vmatpush3.msra.mxu0 %v4458_v11  ;;  %4898 = vmatpush3.msra.mxu1 %v4470_v22  ;;  %v4481_v22 = vld [vmem:[%s5781_s14 + $0x1] ss:$0 sm:$0xff]  ;;  %s4354_s14 = sshll.u32 %s5078_s13, 4  ;;  %s4355_s14 = int_to_ptr.vmem [resolvable:$true] %s4354_s14 }
0x1e4d   :  { %4910 = vmatprep.subr.mxu0 %v5065_v6  ;;  %4899 = vmatprep.subr.mxu1 %v4469_v29  ;;  %s5040_s6 = scalar_lea.vmem %s4355_s14, 32  ;;  %p5045_p8 = scmp.lt.s32.totalorder %s4355_s14, %s4355_s14 }
0x1e4e   :  { %4900 = vmatpush3.msra.mxu1 %v4469_v29  ;;  %p5041_p7 = scmp.ne.s32.totalorder %s4355_s14, %s5040_s6  ;;  %p5046_p9 = scmp.lt.s32.totalorder %s5040_s6, %s5040_s6 }
0x1e4f   :  { %4901 = vmatprep.subr.mxu1 %v4468_v30 }
0x1e50   :  { %4902 = vmatpush3.msra.mxu1 %v4468_v30  ;;  %p5047_p10 = por %p5046_p9, %p5045_p8 }
0x1e51   :  { %4903 = vmatprep.subr.mxu1 %v4467_v31 }
0x1e52   :  { %4904 = vmatpush3.msra.mxu1 %v4467_v31  ;;  %p5048_p11 = pnand %p5047_p10, %p5041_p7 }
0x1e53   :  { %4905 = vmatprep.subr.mxu1 %v4466_v32 }
0x1e54   :  { %4906 = vmatpush3.msra.mxu1 %v4466_v32 }
0x1ece   :  { %v3933_v54 = vpop.xlane.xlu0 %3932 }
0x1ecf   :  { %v3935_v55 = vmul.f32 0.03125, %v3933_v54 }
0x1ed0   :  { %v3930_v58 = vpop.xlane.xlu1 %3929 }
0x1ed1   :  { %v3937_v59 = vsub.f32 %v3923_v50, %v3935_v55  ;;  %v3934_v10 = vmul.f32 0.03125, %v3930_v58 }
0x1ed3   :  { %v3936_v62 = vsub.f32 %v3922_v52, %v3934_v10  ;;  %v3939_v63 = vmul.f32 %v3937_v59, %v3937_v59 }
0x1ed5   :  { %v3943_v0 = vsel %vm89_vm0, %v3939_v63, 0.0  ;;  %v3938_v1 = vmul.f32 %v3936_v62, %v3936_v62 }
0x1ed6   :  { %3944 = vadd.xlane.f32.xlu0 %v3943_v0 }
0x1ed7   :  { %v3940_v57 = vsel %vm89_vm0, %v3938_v1, 0.0 }
0x1ed8   :  { %3941 = vadd.xlane.f32.xlu1 %v3940_v57 }
0x1f5f   :  { %v3945_v7 = vpop.xlane.xlu0 %3944 }
0x1f60   :  { %v3947_v8 = vmul.f32 0.03125, %v3945_v7 }
0x1f61   :  { %v3942_v9 = vpop.xlane.xlu1 %3941 }
0x1f62   :  { %v3949_v12 = vadd.f32 1e-05, %v3947_v8  ;;  %v3946_v13 = vmul.f32 0.03125, %v3942_v9 }
0x1f64   :  { %5012 = vrsqrt.f32 %v3949_v12  ;;  %v3948_v14 = vadd.f32 1e-05, %v3946_v13  ;;  %v4258_v13 = vld [vmem:[%s5782_s15 + $0x18] sm:$0xff] }
0x1f66   :  { %5014 = vrsqrt.f32 %v3948_v14  ;;  %v4257_v14 = vld [vmem:[%s5782_s15 + $0x10] sm:$0xff] }
0x1f71   :  { %v5013_v15 = vpop.eup %5012 }
0x1f72   :  { %v3953_v18 = vmul.f32 %v5013_v15, %v3937_v59  ;;  %v4256_v15 = vld [vmem:[%s5782_s15 + $0x8] sm:$0xff] }
0x1f73   :  { %v5015_v19 = vpop.eup %5014 }
0x1f74   :  { %v3952_v20 = vmul.f32 %v5015_v19, %v3936_v62  ;;  %v3961_v21 = vmul.f32 %v4456_v16, %v3953_v18 }
0x1f76   :  { %v3960_v24 = vmul.f32 %v4456_v16, %v3952_v20  ;;  %v3969_v26 = vadd.f32 %v4457_v23, %v3961_v21  ;;  %v4255_v16 = vld [vmem:[%s5782_s15] sm:$0xff] }
0x1f78   :  { %v5691_v25 = vadd.f32 %v4457_v23, %v3960_v24 }
0x1f7a   :  { %4888 = vmatprep.mubr.msk.f32.mxu0 %vm89_vm0, %v5691_v25 }
0x1f7b   :  { %4889 = vmatmul.mubr.msk.f32.vlgmr.msra.gmra.mxu0 %vm89_vm0, %v3969_v26 }
0x1f7c   :  { %4918 = vmatprep.mubr.msk.f32.mxu0 %vm5066_vm1, %v5065_v6  ;;  %4911 = vmatpush3.msra.mxu0 %v4258_v13 }
0x1f7d   :  { %4912 = vmatprep.subr.mxu0 %v5065_v6 }
0x1f7e   :  { %4913 = vmatpush3.msra.mxu0 %v4257_v14 }
0x1f7f   :  { %4914 = vmatprep.subr.mxu0 %v5065_v6 }
0x1f80   :  { %4915 = vmatpush3.msra.mxu0 %v4256_v15 }
0x1f81   :  { %4916 = vmatprep.subr.mxu0 %v5065_v6 }
0x1f82   :  { %4917 = vmatpush3.msra.mxu0 %v4255_v16 }
0x203b   :  { %v4890_v34 = vpop.f32.mrf.mxu0 }
0x203c   :  { %v4061_v35 = vadd.f32 %v4890_v34, %v4463_v33 }
0x203d   :  { %v4055_v36 = vpop.f32.mrf.mxu0 }
0x203e   :  { %v4065_v37 = vmul.f32 %v4061_v35, %v4061_v35  ;;  %v4056_v38 = vadd.f32 %v4463_v33, %v4055_v36 }
0x2040   :  { %v4067_v28 = vmul.f32 %v4065_v37, %v4061_v35  ;;  %v4064_v61 = vmul.f32 %v4056_v38, %v4056_v38 }
0x2042   :  { %v4069_v39 = vmul.f32 0.044715, %v4067_v28  ;;  %v4066_v40 = vmul.f32 %v4064_v61, %v4056_v38 }
0x2044   :  { %v4071_v41 = vadd.f32 %v4069_v39, %v4061_v35  ;;  %v4068_v42 = vmul.f32 0.044715, %v4066_v40 }
0x2046   :  { %v4073_v43 = vmul.f32 0.7978846, %v4071_v41  ;;  %v4070_v44 = vadd.f32 %v4068_v42, %v4056_v38 }
0x2048   :  { %5016 = vtanh.f32 %v4073_v43  ;;  %v4072_v45 = vmul.f32 0.7978846, %v4070_v44 }
0x204a   :  { %5018 = vtanh.f32 %v4072_v45 }
0x2055   :  { %v5017_v60 = vpop.eup %5016 }
0x2056   :  { %v4077_v46 = vadd.f32 1.0, %v5017_v60 }
0x2057   :  { %v5019_v47 = vpop.eup %5018 }
0x2058   :  { %v4076_v48 = vadd.f32 1.0, %v5019_v47  ;;  %v4079_v49 = vmul.f32 0.5, %v4077_v46 }
0x205a   :  { %v4078_v50 = vmul.f32 0.5, %v4076_v48  ;;  %v4081_v52 = vmul.f32 %v4079_v49, %v4061_v35 }
0x205c   :  { %v4080_v51 = vmul.f32 %v4078_v50, %v4056_v38 }
0x205e   :  { %4907 = vmatprep.mubr.msk.f32.mxu1 %vm2021_vm3, %v4080_v51 }
0x205f   :  { %4908 = vmatmul.mubr.msk.f32.vlgmr.msra.gmra.mxu1 %vm2021_vm3, %v4081_v52 }
0x211f   :  { %v4909_v54 = vpop.f32.mrf.mxu1 }
0x2120   :  { %v4177_v55 = vadd.f32 %v4909_v54, %v4475_v53 }
0x2121   :  { %v4171_v58 = vpop.f32.mrf.mxu1 }
0x2122   :  { %v4172_v59 = vadd.f32 %v4475_v53, %v4171_v58  ;;  %v4181_v10 = vadd.f32 %v4177_v55, %v3969_v26 }
0x2124   :  { %v4189_v62 = vsel %vm89_vm0, %v4181_v10, 0.0  ;;  %v4180_v63 = vadd.f32 %v4172_v59, %v5691_v25  ;;  %v4235_v25 = vstv %s5796_s28 }
0x2125   :  { %4190 = vadd.xlane.f32.xlu0 %v4189_v62  ;;  %vm4236_vm4 = vcmp.eq.s32.totalorder %v5225_v17, %v4235_v25 }
0x2126   :  { %v4186_v0 = vsel %vm89_vm0, %v4180_v63, 0.0  ;;  %v4487_v31 = vsel %vm4236_vm4, 1.0, %v5065_v6 }
0x2127   :  { %4187 = vadd.xlane.f32.xlu1 %v4186_v0 }
0x21ae   :  { %v4191_v1 = vpop.xlane.xlu0 %4190 }
0x21af   :  { %v4193_v57 = vmul.f32 0.03125, %v4191_v1 }
0x21b0   :  { %v4188_v56 = vpop.xlane.xlu1 %4187 }
0x21b1   :  { %v4195_v3 = vsub.f32 %v4181_v10, %v4193_v57  ;;  %v4192_v4 = vmul.f32 0.03125, %v4188_v56 }
0x21b3   :  { %v4194_v11 = vsub.f32 %v4180_v63, %v4192_v4  ;;  %v4197_v7 = vmul.f32 %v4195_v3, %v4195_v3 }
0x21b5   :  { %v4201_v8 = vsel %vm89_vm0, %v4197_v7, 0.0  ;;  %v4196_v9 = vmul.f32 %v4194_v11, %v4194_v11 }
0x21b6   :  { %4202 = vadd.xlane.f32.xlu0 %v4201_v8 }
0x21b7   :  { %v4198_v12 = vsel %vm89_vm0, %v4196_v9, 0.0 }
0x21b8   :  { %4199 = vadd.xlane.f32.xlu1 %v4198_v12 }
0x223f   :  { %v4203_v18 = vpop.xlane.xlu0 %4202 }
0x2240   :  { %v4205_v19 = vmul.f32 0.03125, %v4203_v18 }
0x2241   :  { %v4200_v20 = vpop.xlane.xlu1 %4199 }
0x2242   :  { %v4207_v21 = vadd.f32 1e-05, %v4205_v19  ;;  %v4204_v23 = vmul.f32 0.03125, %v4200_v20 }
0x2244   :  { %5020 = vrsqrt.f32 %v4207_v21  ;;  %v4206_v24 = vadd.f32 1e-05, %v4204_v23 }
0x2246   :  { %5022 = vrsqrt.f32 %v4206_v24 }
0x2251   :  { %v5021_v26 = vpop.eup %5020 }
0x2252   :  { %v4211_v5 = vmul.f32 %v5021_v26, %v4195_v3 }
0x2253   :  { %v5023_v2 = vpop.eup %5022 }
0x2254   :  { %v4219_v29 = vmul.f32 %v4480_v27, %v4211_v5  ;;  %v4210_v30 = vmul.f32 %v5023_v2, %v4194_v11 }
0x2256   :  { %v4218_v32 = vmul.f32 %v4480_v27, %v4210_v30  ;;  %v4227_v33 = vadd.f32 %v4481_v22, %v4219_v29 }
0x2258   :  { %v4226_v34 = vadd.f32 %v4481_v22, %v4218_v32  ;;  %v4240_v35 = vmul.f32 %v4487_v31, %v4227_v33 }
0x225a   :  { %v4239_v36 = vmul.f32 %v4487_v31, %v4226_v34  ;;  %v4248_v37 = vsel %vm89_vm0, %v4240_v35, 0.0 }
0x225b   :  { %v4249_v38 = vrot.slane %v4248_v37, 4 }
0x225c   :  { %v4241_v28 = vsel %vm89_vm0, %v4239_v36, 0.0 }
0x225d   :  { %v4242_v17 = vrot.slane %v4241_v28, 4  ;;  %v4250_v61 = vadd.f32 %v4249_v38, %v4248_v37 }
0x225f   :  { %v4243_v39 = vadd.f32 %v4242_v17, %v4241_v28  ;;  %v4251_v40 = vrot.slane %v4250_v61, 2 }
0x2261   :  { %v4244_v41 = vrot.slane %v4243_v39, 2  ;;  %v4252_v42 = vadd.f32 %v4251_v40, %v4250_v61 }
0x2263   :  { %v4245_v43 = vadd.f32 %v4244_v41, %v4243_v39  ;;  %v4253_v44 = vrot.slane %v4252_v42, 1 }
0x2265   :  { %v4246_v45 = vrot.slane %v4245_v43, 1  ;;  %v4254_v60 = vadd.f32 %v4253_v44, %v4252_v42 }
0x2267   :  { %v4247_v6 = vadd.f32 %v4246_v45, %v4245_v43 }
0x2269   :  { %v4262_v46 = vsel %vm4261_vm5, %v4254_v60, %v4247_v6 }
0x226a   :  { %4919 = vmatmul.mubr.msk.f32.vlgmr.msra.gmra.mxu0 %vm89_vm0, %v4262_v46 }
0x232a   :  { %v4331_v47 = vpop.f32.mrf.mxu0 }
0x232b   :  { %v4336_v48 = vsel %vm4335_vm6, %v4331_v47, -inf }
0x232c   :  { %4337 = vmax.xlane.f32.xlu1 %v4336_v48  ;;  %v4920_v49 = vpop.f32.mrf.mxu0 }
0x23b5   :  { %v4338_v50 = vpop.xlane.xlu1 %4337 }
0x23b6   :  { %v4339_v51 = vsub.f32 %v4331_v47, %v4338_v50 }
0x23b8   :  { %v4340_v52 = vmul.f32 1.442695, %v4339_v51 }
0x23ba   :  { %5024 = vpow2.f32 %v4340_v52 }
0x23c7   :  { %v5025_v53 = vpop.eup %5024 }
0x23c8   :  { %v4342_v54 = vsel %vm4335_vm6, %v5025_v53, 0.0 }
0x23c9   :  { %4343 = vadd.xlane.f32.xlu0 %v4342_v54 }
0x2452   :  { %v4344_v55 = vpop.xlane.xlu0 %4343 }
0x2453   :  { %5026 = vrcp.f32 %v4344_v55 }
0x2460   :  { %v5027_v58 = vpop.eup %5026 }
0x2461   :  { %v4346_v59 = vmul.f32 %v5027_v58, %v5025_v53 }
0x2463   :  { %4347 = vst.msk [vmem:[#allocation4] sm:$0x3] %vm4335_vm6, %v4346_v59 }
0x2464   :  { %5051 = shalt.err (!%p5048_p11)
}
0x2465   :  { %4357 = dma.vmem_to_hbm [thread:$0]  %s4355_s14, 32, %s5783_s16, [#allocation5]  }
0x2466   :  { %5062 = dma.done.wait [#allocation5], 32  }
0x2467   :  { %5063 = vsyncadd [#allocation5], 4294967264 }
0x2468   :  { %4361 = vsyncpa [#allocation5], 1 }

</bundles_post_ra>
